<compile_context>
chip_gen: v7x
topology: tpu7x:2x2x1
jax: 0.10.0
libtpu: 0.0.40
codegen_flags: <defaults>
</compile_context>

<pallas_src>
import jax
import jax.numpy as jnp
from jax.experimental import pallas as pl
from jax.experimental.pallas import tpu as pltpu

EPS = 1e-5


def make_residual_block_kernel(n, c, l):
    """Build the kernel for static (N, C, L). Kernel operates on a (C, N*L) slab."""
    nl = n * l
    inv_cnt = 1.0 / float(nl)
    l_is_pow2 = (l & (l - 1)) == 0

    def kernel(x_ref, w1_ref, g1_ref, b1_ref, w2_ref, g2_ref, b2_ref, o_ref):
        x = x_ref[...]  # (C, N*L) f32, batches side by side on lanes

        # Hoisted boundary masks, built once and reused by both conv layers.
        # Zero columns where a lane-roll would leak across a batch boundary
        # (or past the zero padding of the kernel=3 / padding=1 convolution).
        col = jax.lax.broadcasted_iota(jnp.int32, (c, nl), 1)
        col = (col & (l - 1)) if l_is_pow2 else (col % l)
        first_col = col == 0          # zeroed after the right-shift (tap k=0)
        last_col = col == l - 1       # zeroed after the left-shift  (tap k=2)

        def im2col(s):
            # Stack the three conv taps along sublanes: (3C, N*L).
            sr = jnp.where(first_col, 0.0, pltpu.roll(s, shift=1, axis=1))       # s[:, i-1]
            sl = jnp.where(last_col, 0.0, pltpu.roll(s, shift=nl - 1, axis=1))   # s[:, i+1]
            return jnp.concatenate([sr, s, sl], axis=0)

        def conv3(s, w_ref):
            # conv1d(kernel=3, pad=1, no bias) as a single f32 MXU matmul.
            return jnp.dot(w_ref[...], im2col(s), preferred_element_type=jnp.float32)

        def batchnorm(h, g_ref, b_ref):
            # Training-mode BN, batch statistics, biased variance.
            # Two independent reductions (sum, sum-of-squares) issued back to back
            # so the XLU round trips don't serialize.
            s1 = jnp.sum(h, axis=1, keepdims=True)
            s2 = jnp.sum(h * h, axis=1, keepdims=True)
            mean = s1 * inv_cnt
            var = s2 * inv_cnt - mean * mean
            scale = g_ref[...] * jax.lax.rsqrt(var + EPS)
            return (h - mean) * scale + b_ref[...]

        # ---- conv1 -> BN1 -> ReLU ----
        h1 = conv3(x, w1_ref)                                   # (C, N*L)
        a1 = jnp.maximum(batchnorm(h1, g1_ref, b1_ref), 0.0)

        # ---- conv2 -> BN2 ----
        h2 = conv3(a1, w2_ref)                                  # (C, N*L)
        y = batchnorm(h2, g2_ref, b2_ref)

        # ---- residual add; single lane-dense slab store ----
        o_ref[...] = x + y

    return kernel


def prepare_params(w1, g1, b1, w2, g2, b2):
    """One-time parameter layout prep (do NOT repeat per call).

    Torch Conv1d weight (C_out, C_in, 3) -> (C_out, 3*C_in) with column block k
    holding tap k, matching the [shift_right; identity; shift_left] im2col rows.
    """
    c = w1.shape[0]

    def to_mat(w):
        return jnp.transpose(w, (0, 2, 1)).reshape(c, 3 * c).astype(jnp.float32)

    def to_col(v):
        return v.reshape(c, 1).astype(jnp.float32)

    return (to_mat(w1), to_col(g1), to_col(b1), to_mat(w2), to_col(g2), to_col(b2))


@jax.jit
def residual_block(x, w1m, g1c, b1c, w2m, g2c, b2c):
    """x: (N, C, L) f32.  Params already prepared by prepare_params()."""
    n, c, l = x.shape
    # Lane-dense slab: (N, C, L) -> (C, N*L), done once in the wrapper.
    x_slab = jnp.transpose(x.astype(jnp.float32), (1, 0, 2)).reshape(c, n * l)

    vmem_spec = pl.BlockSpec(memory_space=pltpu.MemorySpace.VMEM)
    out_slab = pl.pallas_call(
        make_residual_block_kernel(n, c, l),
        out_shape=jax.ShapeDtypeStruct((c, n * l), jnp.float32),
        in_specs=[vmem_spec] * 7,
        out_specs=vmem_spec,
    )(x_slab, w1m, g1c, b1c, w2m, g2c, b2c)

    return jnp.transpose(out_slab.reshape(c, n, l), (1, 0, 2))


# ---------------- pure-JAX reference (matches PyTorch training-mode forward) ----------------
def ref_forward(x, w1, g1, b1, w2, g2, b2, eps=EPS):
    def conv1d(x, w):
        return jax.lax.conv_general_dilated(
            x, w, window_strides=(1,), padding=((1, 1),),
            dimension_numbers=("NCH", "OIH", "NCH"))

    def bn(h, g, b):
        mean = h.mean(axis=(0, 2), keepdims=True)
        var = h.var(axis=(0, 2), keepdims=True)               # biased
        return (h - mean) * jax.lax.rsqrt(var + eps) * g.reshape(1, -1, 1) + b.reshape(1, -1, 1)

    h = jax.nn.relu(bn(conv1d(x, w1), g1, b1))
    h = bn(conv1d(h, w2), g2, b2)
    return x + h


if __name__ == "__main__":
    # N*L = 2048 lanes per call so the fixed pallas_call/DMA overhead is amortized.
    N, C, L = 16, 8, 128

    key = jax.random.PRNGKey(0)
    kx, k1, k2, kg1, kb1, kg2, kb2 = jax.random.split(key, 7)
    x = jax.random.normal(kx, (N, C, L), jnp.float32)
    w1 = 0.2 * jax.random.normal(k1, (C, C, 3), jnp.float32)   # Conv1d(channels, channels, 3)
    w2 = 0.2 * jax.random.normal(k2, (C, C, 3), jnp.float32)
    g1 = 1.0 + 0.1 * jax.random.normal(kg1, (C,), jnp.float32)  # BatchNorm1d affine params
    b1 = 0.1 * jax.random.normal(kb1, (C,), jnp.float32)
    g2 = 1.0 + 0.1 * jax.random.normal(kg2, (C,), jnp.float32)
    b2 = 0.1 * jax.random.normal(kb2, (C,), jnp.float32)

    params = prepare_params(w1, g1, b1, w2, g2, b2)   # one-time layout prep
    out = residual_block(x, *params)
    jax.block_until_ready(out)

    ref = ref_forward(x, w1, g1, b1, w2, g2, b2)
    err = float(jnp.max(jnp.abs(out - ref)))
    assert jnp.allclose(out, ref, atol=1e-3, rtol=1e-3), f"max abs err = {err}"
    print("KERNEL_OK")
</pallas_src>

<mosaic_0001>
module attributes {stable_mosaic.version = 11 : i64} {
  func.func @kernel(%arg0: memref<8x2048xf32, #tpu.memory_space<vmem>>, %arg1: memref<8x24xf32, #tpu.memory_space<vmem>>, %arg2: memref<8x1xf32, #tpu.memory_space<vmem>>, %arg3: memref<8x1xf32, #tpu.memory_space<vmem>>, %arg4: memref<8x24xf32, #tpu.memory_space<vmem>>, %arg5: memref<8x1xf32, #tpu.memory_space<vmem>>, %arg6: memref<8x1xf32, #tpu.memory_space<vmem>>, %arg7: memref<8x2048xf32, #tpu.memory_space<vmem>>) attributes {dimension_semantics = [], scalar_prefetch = 0 : i64, scratch_operands = 0 : i64, tpu.core_type = #tpu.core_type<tc>} {
    %c0 = arith.constant 0 : index
    %c0_0 = arith.constant 0 : index
    %0 = vector.load %arg0[%c0, %c0_0] : memref<8x2048xf32, #tpu.memory_space<vmem>>, vector<8x2048xf32>
    %1 = tpu.iota {dimensions = array<i32: 1>} : vector<8x2048xi32>
    %c127_i32 = arith.constant 127 : i32
    %2 = vector.broadcast %c127_i32 : i32 to vector<8x2048xi32>
    %3 = arith.andi %1, %2 : vector<8x2048xi32>
    %c0_i32 = arith.constant 0 : i32
    %4 = vector.broadcast %c0_i32 : i32 to vector<8x2048xi32>
    %5 = arith.cmpi eq, %3, %4 : vector<8x2048xi32>
    %c127_i32_1 = arith.constant 127 : i32
    %6 = vector.broadcast %c127_i32_1 : i32 to vector<8x2048xi32>
    %7 = arith.cmpi eq, %3, %6 : vector<8x2048xi32>
    %c0_2 = arith.constant 0 : index
    %c0_3 = arith.constant 0 : index
    %8 = vector.load %arg1[%c0_2, %c0_3] : memref<8x24xf32, #tpu.memory_space<vmem>>, vector<8x24xf32>
    %c1_i32 = arith.constant 1 : i32
    %9 = tpu.dynamic_rotate %0 by %c1_i32 dim 1 : vector<8x2048xf32>, i32 -> vector<8x2048xf32>
    %cst = arith.constant 0.000000e+00 : f32
    %10 = vector.broadcast %cst : f32 to vector<8x2048xf32>
    %11 = arith.select %5, %10, %9 : vector<8x2048xi1>, vector<8x2048xf32>
    %c2047_i32 = arith.constant 2047 : i32
    %12 = tpu.dynamic_rotate %0 by %c2047_i32 dim 1 : vector<8x2048xf32>, i32 -> vector<8x2048xf32>
    %cst_4 = arith.constant 0.000000e+00 : f32
    %13 = vector.broadcast %cst_4 : f32 to vector<8x2048xf32>
    %14 = arith.select %7, %13, %12 : vector<8x2048xi1>, vector<8x2048xf32>
    %15 = tpu.concatenate %11, %0, %14 in 0 : vector<8x2048xf32>, vector<8x2048xf32>, vector<8x2048xf32> -> vector<24x2048xf32>
    %cst_5 = arith.constant dense<0.000000e+00> : vector<8x2048xf32>
    %16 = tpu.matmul %8, %15, %cst_5 {dimension_numbers = #tpu.dot_dimension_numbers<[1], [0], [0], [1], [0, 0, 1, 1], [], []>} : vector<8x24xf32>, vector<24x2048xf32>, vector<8x2048xf32> -> vector<8x2048xf32>
    %cst_6 = arith.constant dense<0.000000e+00> : vector<8xf32>
    %17 = vector.multi_reduction <add>, %16, %cst_6 [1] : vector<8x2048xf32> to vector<8xf32>
    %18 = vector.shape_cast %17 : vector<8xf32> to vector<8x1xf32>
    %19 = arith.mulf %16, %16 : vector<8x2048xf32>
    %cst_7 = arith.constant dense<0.000000e+00> : vector<8xf32>
    %20 = vector.multi_reduction <add>, %19, %cst_7 [1] : vector<8x2048xf32> to vector<8xf32>
    %21 = vector.shape_cast %20 : vector<8xf32> to vector<8x1xf32>
    %cst_8 = arith.constant 4.8828125E-4 : f32
    %22 = vector.broadcast %cst_8 : f32 to vector<8x1xf32>
    %23 = arith.mulf %18, %22 : vector<8x1xf32>
    %cst_9 = arith.constant 4.8828125E-4 : f32
    %24 = vector.broadcast %cst_9 : f32 to vector<8x1xf32>
    %25 = arith.mulf %21, %24 : vector<8x1xf32>
    %26 = arith.mulf %23, %23 : vector<8x1xf32>
    %27 = arith.subf %25, %26 : vector<8x1xf32>
    %c0_10 = arith.constant 0 : index
    %c0_11 = arith.constant 0 : index
    %28 = vector.load %arg2[%c0_10, %c0_11] : memref<8x1xf32, #tpu.memory_space<vmem>>, vector<8x1xf32>
    %cst_12 = arith.constant 9.99999974E-6 : f32
    %29 = vector.broadcast %cst_12 : f32 to vector<8x1xf32>
    %30 = arith.addf %27, %29 : vector<8x1xf32>
    %31 = math.rsqrt %30 : vector<8x1xf32>
    %32 = arith.mulf %28, %31 : vector<8x1xf32>
    %33 = vector.broadcast %23 : vector<8x1xf32> to vector<8x2048xf32>
    %34 = arith.subf %16, %33 : vector<8x2048xf32>
    %35 = vector.broadcast %32 : vector<8x1xf32> to vector<8x2048xf32>
    %36 = arith.mulf %34, %35 : vector<8x2048xf32>
    %c0_13 = arith.constant 0 : index
    %c0_14 = arith.constant 0 : index
    %37 = vector.load %arg3[%c0_13, %c0_14] : memref<8x1xf32, #tpu.memory_space<vmem>>, vector<8x1xf32>
    %38 = vector.broadcast %37 : vector<8x1xf32> to vector<8x2048xf32>
    %39 = arith.addf %36, %38 : vector<8x2048xf32>
    %cst_15 = arith.constant 0.000000e+00 : f32
    %40 = vector.broadcast %cst_15 : f32 to vector<8x2048xf32>
    %41 = arith.maximumf %39, %40 : vector<8x2048xf32>
    %c0_16 = arith.constant 0 : index
    %c0_17 = arith.constant 0 : index
    %42 = vector.load %arg4[%c0_16, %c0_17] : memref<8x24xf32, #tpu.memory_space<vmem>>, vector<8x24xf32>
    %c1_i32_18 = arith.constant 1 : i32
    %43 = tpu.dynamic_rotate %41 by %c1_i32_18 dim 1 : vector<8x2048xf32>, i32 -> vector<8x2048xf32>
    %cst_19 = arith.constant 0.000000e+00 : f32
    %44 = vector.broadcast %cst_19 : f32 to vector<8x2048xf32>
    %45 = arith.select %5, %44, %43 : vector<8x2048xi1>, vector<8x2048xf32>
    %c2047_i32_20 = arith.constant 2047 : i32
    %46 = tpu.dynamic_rotate %41 by %c2047_i32_20 dim 1 : vector<8x2048xf32>, i32 -> vector<8x2048xf32>
    %cst_21 = arith.constant 0.000000e+00 : f32
    %47 = vector.broadcast %cst_21 : f32 to vector<8x2048xf32>
    %48 = arith.select %7, %47, %46 : vector<8x2048xi1>, vector<8x2048xf32>
    %49 = tpu.concatenate %45, %41, %48 in 0 : vector<8x2048xf32>, vector<8x2048xf32>, vector<8x2048xf32> -> vector<24x2048xf32>
    %cst_22 = arith.constant dense<0.000000e+00> : vector<8x2048xf32>
    %50 = tpu.matmul %42, %49, %cst_22 {dimension_numbers = #tpu.dot_dimension_numbers<[1], [0], [0], [1], [0, 0, 1, 1], [], []>} : vector<8x24xf32>, vector<24x2048xf32>, vector<8x2048xf32> -> vector<8x2048xf32>
    %cst_23 = arith.constant dense<0.000000e+00> : vector<8xf32>
    %51 = vector.multi_reduction <add>, %50, %cst_23 [1] : vector<8x2048xf32> to vector<8xf32>
    %52 = vector.shape_cast %51 : vector<8xf32> to vector<8x1xf32>
    %53 = arith.mulf %50, %50 : vector<8x2048xf32>
    %cst_24 = arith.constant dense<0.000000e+00> : vector<8xf32>
    %54 = vector.multi_reduction <add>, %53, %cst_24 [1] : vector<8x2048xf32> to vector<8xf32>
    %55 = vector.shape_cast %54 : vector<8xf32> to vector<8x1xf32>
    %cst_25 = arith.constant 4.8828125E-4 : f32
    %56 = vector.broadcast %cst_25 : f32 to vector<8x1xf32>
    %57 = arith.mulf %52, %56 : vector<8x1xf32>
    %cst_26 = arith.constant 4.8828125E-4 : f32
    %58 = vector.broadcast %cst_26 : f32 to vector<8x1xf32>
    %59 = arith.mulf %55, %58 : vector<8x1xf32>
    %60 = arith.mulf %57, %57 : vector<8x1xf32>
    %61 = arith.subf %59, %60 : vector<8x1xf32>
    %c0_27 = arith.constant 0 : index
    %c0_28 = arith.constant 0 : index
    %62 = vector.load %arg5[%c0_27, %c0_28] : memref<8x1xf32, #tpu.memory_space<vmem>>, vector<8x1xf32>
    %cst_29 = arith.constant 9.99999974E-6 : f32
    %63 = vector.broadcast %cst_29 : f32 to vector<8x1xf32>
    %64 = arith.addf %61, %63 : vector<8x1xf32>
    %65 = math.rsqrt %64 : vector<8x1xf32>
    %66 = arith.mulf %62, %65 : vector<8x1xf32>
    %67 = vector.broadcast %57 : vector<8x1xf32> to vector<8x2048xf32>
    %68 = arith.subf %50, %67 : vector<8x2048xf32>
    %69 = vector.broadcast %66 : vector<8x1xf32> to vector<8x2048xf32>
    %70 = arith.mulf %68, %69 : vector<8x2048xf32>
    %c0_30 = arith.constant 0 : index
    %c0_31 = arith.constant 0 : index
    %71 = vector.load %arg6[%c0_30, %c0_31] : memref<8x1xf32, #tpu.memory_space<vmem>>, vector<8x1xf32>
    %72 = vector.broadcast %71 : vector<8x1xf32> to vector<8x2048xf32>
    %73 = arith.addf %70, %72 : vector<8x2048xf32>
    %74 = arith.addf %0, %73 : vector<8x2048xf32>
    %c0_32 = arith.constant 0 : index
    %c0_33 = arith.constant 0 : index
    %75 = vector.load %arg7[%c0_32, %c0_33] : memref<8x2048xf32, #tpu.memory_space<vmem>>, vector<8x2048xf32>
    tpu.vector_store %arg7[%c0_32, %c0_33], %74 {strides = array<i32>} : memref<8x2048xf32, #tpu.memory_space<vmem>>, vector<8x2048xf32>,
    return
  }
}

</mosaic_0001>

<bundles_post_ra>
// kernel: residual_block.1
= control target key start
LH: loop header
LB: loop body
LE: loop exit
PB: predicated region body
PF: predicated region fallthrough
CT: control target
= control target key end

     0   :  { %12 = vsyncpa [#allocation3], 0  ;;  %s3368_s0 = inlined_call_operand.hbm [shape: f32[8,2048], index: 0, kind: input, shape index: {}]   ;;  %s3369_s1 = inlined_call_operand.vmem [shape: f32[8,24], index: 1, kind: input, shape index: {}]   ;;  %s3370_s2 = inlined_call_operand.vmem [shape: f32[8,1], index: 2, kind: input, shape index: {}]   ;;  %s3371_s3 = inlined_call_operand.vmem [shape: f32[8,1], index: 3, kind: input, shape index: {}]   ;;  %s3372_s4 = inlined_call_operand.vmem [shape: f32[8,24], index: 4, kind: input, shape index: {}]   ;;  %s3373_s5 = inlined_call_operand.vmem [shape: f32[8,1], index: 5, kind: input, shape index: {}]   ;;  %s3374_s6 = inlined_call_operand.vmem [shape: f32[8,1], index: 6, kind: input, shape index: {}]   ;;  %s3375_s7 = inlined_call_operand.hbm [shape: f32[8,2048], index: 7, kind: output, shape index: {}]  }
   0x1   :  { %13 = vsyncpa [#allocation4], 0  ;;  %s2239_s24 = smov [#allocation2]   ;;  %s2191_s28 = scalar_lea.hbm %s3368_s0, 2048 }
   0x2   :  { %s20_s25 = sshll.u32 %s2239_s24, 4  ;;  %p2192_p0 = scmp.ne.s32.totalorder %s3368_s0, %s2191_s28  ;;  %s21_s25 = int_to_ptr.vmem [resolvable:$true] %s20_s25 }
   0x3   :  { %p2195_p1 = scmp.lt.u32.totalorder %s2191_s28, %s3368_s0 }
   0x5   :  { %p2197_p2 = pnand %p2195_p1, %p2192_p0 }
   0x7   :  { %2200 = shalt.err (!%p2197_p2)
}
   0x8   :  { %s2201_s10 = scalar_lea.vmem %s21_s25, 2048  ;;  %p2206_p4 = scmp.lt.s32.totalorder %s21_s25, %s21_s25 }
   0x9   :  { %p2202_p3 = scmp.ne.s32.totalorder %s21_s25, %s2201_s10  ;;  %p2207_p5 = scmp.lt.s32.totalorder %s2201_s10, %s2201_s10 }
   0xb   :  { %p2208_p6 = por %p2207_p5, %p2206_p4 }
   0xd   :  { %p2209_p7 = pnand %p2208_p6, %p2202_p3 }
   0xf   :  { %2212 = shalt.err (!%p2209_p7)
}
  0x10   :  { %23 = dma.hbm_to_vmem [thread:$0]  %s3368_s0, 2048, %s21_s25, [#allocation3]  }
  0x11   :  { %2235 = dma.done.wait [#allocation3], 2048  }
  0x12   :  { %2236 = vsyncadd [#allocation3], 4294965248  ;;  %v2298_v0 = vld [vmem:[#allocation2 + $0x18] sm:$0xff]  ;;  %v2300_v1 = vld [vmem:[#allocation2 + $0x20] sm:$0xff]  ;;  %s2240_s0 = smov 1   ;;  %v3400_v11 = vmov 0.0   ;;  %v55_v24 = vlaneseq }
  0x13   :  { %v2302_v2 = vld [vmem:[#allocation2] sm:$0xff]  ;;  %v2109_v3 = vpack.i.bf16 %v2300_v1, %v2298_v0  ;;  %v2306_v4 = vld [vmem:[#allocation2 + $0x8] sm:$0xff]  ;;  %v2308_v5 = vld [vmem:[#allocation2 + $0x10] sm:$0xff]  ;;  %319 = vmatprep.mubr.f32.mxu0 %v3400_v11  ;;  %390 = vmatprep.mubr.f32.mxu1 %v3400_v11  ;;  %s2242_s13 = smov 127   ;;  %vm3379_vm2 = vmmov 1   ;;  %v3410_v50 = vmov 0 }
  0x14   :  { %v2310_v6 = vld [vmem:[#allocation2 + $0x78] sm:$0xff]  ;;  %v2099_v7 = vpack.i.bf16 %v2306_v4, %v2302_v2  ;;  %v2318_v9 = vld [vmem:[#allocation2 + $0x28] sm:$0xff]  ;;  %v2320_v10 = vld [vmem:[#allocation2 + $0x30] sm:$0xff]  ;;  %v2389_v25 = vand.u32 127, %v55_v24  ;;  %v3426_v44 = vmov 0 }
  0x15   :  { %2110 = vrot.lane.b32.xlu1 %v2109_v3, %s2240_s0  ;;  %v2104_v8 = vpack.i.bf16 %v2308_v5, %v2310_v6  ;;  %v2114_v12 = vpack.i.bf16 %v2320_v10, %v2318_v9  ;;  %v2332_v13 = vld [vmem:[#allocation2 + $0x38] sm:$0xff]  ;;  %v2334_v14 = vld [vmem:[#allocation2 + $0x40] sm:$0xff]  ;;  %v2345_v16 = vld [vmem:[#allocation2 + $0x48] sm:$0xff] }
  0x16   :  { %2100 = vrot.lane.b32.xlu0 %v2099_v7, %s2240_s0  ;;  %v2119_v15 = vpack.i.bf16 %v2334_v14, %v2332_v13  ;;  %v2347_v17 = vld [vmem:[#allocation2 + $0x50] sm:$0xff]  ;;  %v2355_v19 = vld [vmem:[#allocation2 + $0x58] sm:$0xff]  ;;  %v2357_v20 = vld [vmem:[#allocation2 + $0x60] sm:$0xff]  ;;  %v57_v26 = vadd.s32 128, %v2389_v25  ;;  %v2393_v28 = vadd.s32 384, %v2389_v25  ;;  %v2396_v29 = vadd.s32 256, %v2389_v25 }
  0x17   :  { %v2124_v18 = vpack.i.bf16 %v2347_v17, %v2345_v16  ;;  %v2129_v21 = vpack.i.bf16 %v2357_v20, %v2355_v19  ;;  %v2371_v22 = vld [vmem:[#allocation2 + $0x68] sm:$0xff]  ;;  %v2377_v23 = vld [vmem:[#allocation2 + $0x70] sm:$0xff]  ;;  %vm3378_vm0 = vcmp.lt.s32.totalorder %v2389_v25, 1  ;;  %v2402_v36 = vadd.s32 640, %v2389_v25 }
  0x18   :  { %v73_v27 = vand.u32 127, %v57_v26  ;;  %v75_v32 = vand.u32 127, %v2393_v28  ;;  %v74_v33 = vand.u32 127, %v2396_v29  ;;  %v2405_v37 = vadd.s32 512, %v2389_v25 }
  0x19   :  { %188 = vrot.lane.b32.xlu1 %v2306_v4, %s2242_s13  ;;  %vm1965_vm4 = vcmp.ne.s32.totalorder %v2389_v25, 0  ;;  %v77_v48 = vand.u32 127, %v2402_v36  ;;  %vm3377_vm7 = vcmp.lt.s32.totalorder %v2389_v25, 127  ;;  %v2447_v52 = vadd.s32 896, %v2389_v25 }
  0x1a   :  { %2105 = vrot.lane.b32.xlu0 %v2104_v8, %s2240_s0  ;;  %vm1964_vm1 = vcmp.ne.s32.totalorder %v73_v27, 0  ;;  %vm2420_vm5 = vcmp.ne.s32.totalorder %v75_v32, 0  ;;  %vm2426_vm6 = vcmp.ne.s32.totalorder %v74_v33, 0  ;;  %vm2437_vm8 = vmpackc.low %vm3379_vm2, %vm1965_vm4  ;;  %vm2441_vm9 = vcmp.ne.s32.totalorder %v73_v27, 127 }
  0x1b   :  { %vm2410_vm3 = vmpackc.low %vm3379_vm2, %vm1964_vm1  ;;  %v3411_v50 = vsel %vm2441_vm9, 4294967295, %v3410_v50  ;;  %v76_v51 = vand.u32 127, %v2405_v37  ;;  %v2474_v3 = vadd.s32 768, %v2389_v25  ;;  %vm1972_vm12 = vcmp.ne.s32.totalorder %v77_v48, 0 }
  0x1c   :  { %vm2458_vm10 = vmpackc.low %vm3379_vm2, %vm2420_vm5  ;;  %vm3376_vm14 = vcmp.ne.s32.totalorder %v2389_v25, 127  ;;  %vm3383_vm1 = vcmask 195584   ;;  %vm2534_vm5 = vcmp.ne.s32.totalorder %v75_v32, 127  ;;  %v2552_v28 = vadd.s32 1152, %v2389_v25 }
  0x1d   :  { %2115 = vrot.lane.b32.xlu1 %v2114_v12, %s2240_s0  ;;  %vm2469_vm11 = vmpackc.low %vm3379_vm2, %vm2426_vm6  ;;  %vm2489_vm13 = vcmp.ne.s32.totalorder %v76_v51, 0  ;;  %v78_v24 = vand.u32 127, %v2474_v3  ;;  %v2559_v29 = vadd.s32 1024, %v2389_v25  ;;  %v3432_v36 = vmov 0 }
  0x1e   :  { %190 = vrot.lane.b32.xlu0 %v2308_v5, %s2242_s13  ;;  %vm2505_vm15 = vmpackc.low %vm3379_vm2, %vm1972_vm12  ;;  %vm2544_vm12 = vcmp.ne.s32.totalorder %v74_v33, 127 }
  0x1f   :  { %vm2521_vm4 = vmpackc.low %vm3379_vm2, %vm2489_vm13  ;;  %vm1977_vm13 = vcmp.ne.s32.totalorder %v78_v24, 0  ;;  %v80_v37 = vand.u32 127, %v2559_v29 }
  0x21   :  { %192 = vrot.lane.b32.xlu1 %v2298_v0, %s2242_s13 }
  0x22   :  { %186 = vrot.lane.b32.xlu0 %v2302_v2, %s2242_s13 }
  0x25   :  { %2120 = vrot.lane.b32.xlu1 %v2119_v15, %s2240_s0  ;;  %v79_v15 = vand.u32 127, %v2447_v52 }
  0x26   :  { %194 = vrot.lane.b32.xlu0 %v2300_v1, %s2242_s13 }
  0x27   :  { %vm1976_vm6 = vcmp.ne.s32.totalorder %v79_v15, 0 }
  0x29   :  { %198 = vrot.lane.b32.xlu1 %v2320_v10, %s2242_s13 }
  0x2a   :  { %196 = vrot.lane.b32.xlu0 %v2318_v9, %s2242_s13 }
  0x2d   :  { %200 = vrot.lane.b32.xlu1 %v2332_v13, %s2242_s13 }
  0x2e   :  { %2125 = vrot.lane.b32.xlu0 %v2124_v18, %s2240_s0 }
  0x31   :  { %2130 = vrot.lane.b32.xlu1 %v2129_v21, %s2240_s0  ;;  %v3418_v21 = vmov 0 }
  0x32   :  { %202 = vrot.lane.b32.xlu0 %v2334_v14, %s2242_s13  ;;  %v3419_v21 = vsel %vm2505_vm15, 4294967295, %v3418_v21 }
  0x35   :  { %206 = vrot.lane.b32.xlu1 %v2347_v17, %s2242_s13 }
  0x36   :  { %204 = vrot.lane.b32.xlu0 %v2345_v16, %s2242_s13 }
  0x39   :  { %208 = vrot.lane.b32.xlu1 %v2355_v19, %s2242_s13 }
  0x3a   :  { %147 = vrot.lane.b32.xlu0 %v2371_v22, %s2240_s0 }
  0x3d   :  { %149 = vrot.lane.b32.xlu1 %v2377_v23, %s2240_s0 }
  0x3e   :  { %210 = vrot.lane.b32.xlu0 %v2357_v20, %s2242_s13 }
  0x41   :  { %214 = vrot.lane.b32.xlu1 %v2377_v23, %s2242_s13 }
  0x42   :  { %212 = vrot.lane.b32.xlu0 %v2371_v22, %s2242_s13 }
  0x46   :  { %216 = vrot.lane.b32.xlu0 %v2310_v6, %s2242_s13 }
  0x87   :  { %v2111_v30 = vpop.permute.xlu1 %2110 }
  0x88   :  { %v2101_v31 = vpop.permute.xlu0 %2100  ;;  %v2112_v45 = vunpack.i.l.bf16 %v2111_v30  ;;  %v2113_v53 = vunpack.i.h.bf16 %v2111_v30  ;;  %v3420_v30 = vmov 0 }
  0x89   :  { %v2103_v34 = vunpack.i.h.bf16 %v2101_v31  ;;  %v2102_v35 = vunpack.i.l.bf16 %v2101_v31  ;;  %v3421_v30 = vsel %vm2521_vm4, 4294967295, %v3420_v30 }
  0x8b   :  { %v189_v38 = vpop.permute.xlu1 %188  ;;  %v168_v39 = vsel %vm3378_vm0, %v2102_v35, %v2103_v34 }
  0x8c   :  { %v2415_v41 = vpop.permute.xlu0 %2105  ;;  %v1996_v42 = vpack.c.bf16 %v2306_v4, %v168_v39  ;;  %v3424_v39 = vmov 0 }
  0x8d   :  { %v2108_v46 = vunpack.i.h.bf16 %v2415_v41  ;;  %v2107_v47 = vunpack.i.l.bf16 %v2415_v41  ;;  %v3425_v39 = vsel %vm2544_vm12, 4294967295, %v3424_v39 }
  0x8e   :  { %1998 = vmatprep.subr.msk.bf16.mxu0 %vm2410_vm3, %v1996_v42 }
  0x8f   :  { %v2116_v54 = vpop.permute.xlu1 %2115  ;;  %v169_v55 = vsel %vm3378_vm0, %v2107_v47, %v2102_v35  ;;  %v166_v56 = vsel %vm3378_vm0, %v2108_v46, %v2112_v45  ;;  %v167_v58 = vsel %vm3378_vm0, %v2103_v34, %v2108_v46  ;;  %v3422_v35 = vmov 0 }
  0x90   :  { %v2117_v59 = vunpack.i.l.bf16 %v2116_v54  ;;  %v191_v60 = vpop.permute.xlu0 %190  ;;  %v1999_v61 = vpack.c.bf16 %v2302_v2, %v169_v55  ;;  %v2002_v62 = vpack.c.bf16 %v2298_v0, %v166_v56  ;;  %v2005_v7 = vpack.c.bf16 %v2308_v5, %v167_v58 }
  0x91   :  { %v232_v4 = vsel %vm3377_vm7, %v189_v38, %v191_v60  ;;  %v165_v5 = vsel %vm3378_vm0, %v2112_v45, %v2113_v53  ;;  %v2118_v26 = vunpack.i.h.bf16 %v2116_v54  ;;  %v3423_v35 = vsel %vm2534_vm5, 4294967295, %v3422_v35 }
  0x92   :  { %v164_v0 = vsel %vm3378_vm0, %v2113_v53, %v2117_v59  ;;  %2001 = vmatpush1.bf16.msk.msra.mxu0 %vm2437_vm8, %v1999_v61  ;;  %2004 = vmatprep.subr.msk.bf16.mxu1 %vm2458_vm10, %v2002_v62  ;;  %v2011_v31 = vpack.c.bf16 %v2300_v1, %v165_v5  ;;  %v3428_v53 = vmov 0  ;;  %v3430_v54 = vmov 0 }
  0x93   :  { %v2008_v8 = vpack.c.bf16 %v2318_v9, %v164_v0  ;;  %1825 = vmatprep.subr.msk.mxu0 %vm2441_vm9, %v232_v4  ;;  %2007 = vmatpush1.bf16.msk.msra.mxu1 %vm2469_vm11, %v2005_v7  ;;  %v193_v12 = vpop.permute.xlu1 %192  ;;  %v2512_v9 = vld [vmem:[%s3369_s1] sm:$0xff]  ;;  %v163_v32 = vsel %vm3378_vm0, %v2117_v59, %v2118_v26  ;;  %v2587_v55 = vadd.s32 1408, %v2389_v25  ;;  %v2600_v58 = vadd.s32 1280, %v2389_v25 }
  0x94   :  { %v2502_v18 = vpop.permute.xlu0 %186  ;;  %v231_v33 = vsel %vm3377_vm7, %v191_v60, %v193_v12  ;;  %v2624_v5 = vadd.s32 1664, %v2389_v25 }
  0x95   :  { %v233_v27 = vsel %vm3377_vm7, %v2502_v18, %v189_v38  ;;  %v83_v61 = vand.u32 127, %v2587_v55  ;;  %v82_v4 = vand.u32 127, %v2600_v58 }
  0x96   :  { %1827 = vmatpush1.msk.msra.mxu0 %vm3376_vm14, %v233_v27  ;;  %vm2568_vm14 = vmpackc.low %vm3379_vm2, %vm1976_vm6  ;;  %vm2594_vm6 = vcmp.ne.s32.totalorder %v76_v51, 127 }
  0x97   :  { %2010 = vmatprep.subr.msk.bf16.mxu0 %vm2505_vm15, %v2008_v8  ;;  %v2121_v34 = vpop.permute.xlu1 %2120  ;;  %1828 = vmatmul.mubr.msk.f32.vlgmr.msra.gmra.mrb[0].mxu0 %vm3383_vm1, %v2512_v9  ;;  %v3427_v44 = vsel %vm2568_vm14, 4294967295, %v3426_v44  ;;  %v3433_v36 = vsel %vm2594_vm6, 4294967295, %v3432_v36 }
  0x98   :  { %v2122_v1 = vunpack.i.l.bf16 %v2121_v34  ;;  %v195_v38 = vpop.permute.xlu0 %194  ;;  %2013 = vmatpush1.bf16.msk.msra.mxu0 %vm2521_vm4, %v2011_v31  ;;  %461 = vmatprep.mubr.f32.mxu0 %v3400_v11  ;;  %v2123_v51 = vunpack.i.h.bf16 %v2121_v34  ;;  %v2646_v34 = vadd.s32 1536, %v2389_v25  ;;  %vm3452_vm4 = vcmp.lt.s32.totalorder %v2389_v25, 127 }
  0x99   :  { %v230_v42 = vsel %vm3377_vm7, %v193_v12, %v195_v38  ;;  %vm2577_vm7 = vcmp.ne.s32.totalorder %v77_v48, 127  ;;  %v81_v48 = vand.u32 127, %v2552_v28  ;;  %v3447_v28 = vmov 0  ;;  %vm3453_vm15 = vmmov %vm3452_vm4 }
  0x9a   :  { %v162_v43 = vsel %vm3378_vm0, %v2118_v26, %v2122_v1  ;;  %1834 = vmatprep.subr.msk.mxu1 %vm2534_vm5, %v230_v42  ;;  %v3429_v53 = vsel %vm2577_vm7, 4294967295, %v3428_v53  ;;  %vm2582_vm0 = vmpackc.low %vm3379_vm2, %vm1977_vm13  ;;  %vm3434_vm13 = vcmp.lt.s32.totalorder %v2389_v25, 127  ;;  %vm3451_vm5 = vcmp.lt.s32.totalorder %v2389_v25, 1 }
  0x9b   :  { %v2014_v45 = vpack.c.bf16 %v2332_v13, %v162_v43  ;;  %1836 = vmatpush1.msk.msra.mxu1 %vm2544_vm12, %v231_v33  ;;  %v199_v46 = vpop.permute.xlu1 %198  ;;  %v3431_v54 = vsel %vm2582_vm0, 4294967295, %v3430_v54  ;;  %v2017_v13 = vpack.c.bf16 %v2320_v10, %v163_v32  ;;  %vm3435_vm2 = vmmov %vm3434_vm13  ;;  %vm2662_vm12 = vcmp.ne.s32.totalorder %v82_v4, 0 }
  0x9c   :  { %v197_v56 = vpop.permute.xlu0 %196  ;;  %1837 = vmatmul.mubr.msk.f32.vlgmr.msra.gmra.mrb[0].mxu1 %vm3383_vm1, %v2512_v9  ;;  %v85_v33 = vand.u32 127, %v2624_v5  ;;  %v2688_v43 = vadd.s32 1920, %v2389_v25 }
  0x9d   :  { %v228_v59 = vsel %vm3434_vm13, %v197_v56, %v199_v46  ;;  %v229_v10 = vsel %vm3435_vm2, %v195_v38, %v197_v56  ;;  %2016 = vmatprep.subr.msk.bf16.mxu1 %vm2568_vm14, %v2014_v45  ;;  %532 = vmatprep.mubr.f32.mxu1 %v3400_v11  ;;  %vm1980_vm2 = vcmp.ne.s32.totalorder %v81_v48, 0  ;;  %vm1981_vm13 = vcmp.ne.s32.totalorder %v80_v37, 0 }
  0x9e   :  { %1843 = vmatprep.subr.msk.mxu0 %vm2577_vm7, %v228_v59  ;;  %2019 = vmatpush1.bf16.msk.msra.mxu1 %vm2582_vm0, %v2017_v13  ;;  %vm3436_vm7 = vcmp.lt.s32.totalorder %v2389_v25, 1  ;;  %vm3440_vm0 = vmmov 1   ;;  %v3445_v38 = vmov 0  ;;  %v3457_v13 = vmov 0 }
  0x9f   :  { %1845 = vmatpush1.msk.msra.mxu0 %vm2594_vm6, %v229_v10  ;;  %v201_v60 = vpop.permute.xlu1 %200  ;;  %v161_v2 = vsel %vm3436_vm7, %v2122_v1, %v2123_v51  ;;  %vm3437_vm6 = vmmov %vm3436_vm7  ;;  %vm2641_vm7 = vcmp.ne.s32.totalorder %v83_v61, 0  ;;  %v3459_v56 = vmov 0  ;;  %v70_v59 = vadd.s32 1792, %v2389_v25 }
  0xa0   :  { %v2126_v62 = vpop.permute.xlu0 %2125  ;;  %1846 = vmatmul.mubr.msk.f32.vlgmr.msra.gmra.mrb[2].mxu0 %vm3383_vm1, %v2512_v9  ;;  %vm2630_vm1 = vcmp.ne.s32.totalorder %v79_v15, 127  ;;  %vm2635_vm14 = vmpackc.low %vm3440_vm0, %vm1980_vm2  ;;  %v227_v42 = vsel %vm3453_vm15, %v199_v46, %v201_v60  ;;  %vm2695_vm15 = vcmp.ne.s32.totalorder %v81_v48, 127  ;;  %v3462_v48 = vmov 0 }
  0xa1   :  { %v2128_v7 = vunpack.i.h.bf16 %v2126_v62  ;;  %v2127_v0 = vunpack.i.l.bf16 %v2126_v62  ;;  %603 = vmatprep.mubr.f32.mxu0 %v3400_v11  ;;  %vm2656_vm2 = vmpackc.low %vm3440_vm0, %vm1981_vm13  ;;  %v3458_v13 = vsel %vm2695_vm15, 4294967295, %v3457_v13 }
  0xa2   :  { %v3448_v28 = vsel %vm2656_vm2, 4294967295, %v3447_v28  ;;  %vm3454_vm13 = vmmov %vm3451_vm5 }
  0xa3   :  { %v160_v8 = vsel %vm3437_vm6, %v2123_v51, %v2127_v0  ;;  %v2131_v12 = vpop.permute.xlu1 %2130  ;;  %vm2651_vm6 = vcmp.ne.s32.totalorder %v78_v24, 127  ;;  %v159_v3 = vsel %vm3451_vm5, %v2127_v0, %v2128_v7  ;;  %vm2682_vm9 = vmpackc.low %vm3440_vm0, %vm2641_vm7  ;;  %vm3461_vm5 = vcmask 195584  }
  0xa4   :  { %v2020_v52 = vpack.c.bf16 %v2345_v16, %v160_v8  ;;  %v2132_v15 = vunpack.i.l.bf16 %v2131_v12  ;;  %v203_v1 = vpop.permute.xlu0 %202  ;;  %v3446_v38 = vsel %vm2651_vm6, 4294967295, %v3445_v38  ;;  %v2023_v16 = vpack.c.bf16 %v2334_v14, %v161_v2 }
  0xa5   :  { %v226_v24 = vsel %vm3452_vm4, %v201_v60, %v203_v1  ;;  %v3455_v14 = vmov 0  ;;  %vm2702_vm4 = vmpackc.low %vm3440_vm0, %vm2662_vm12  ;;  %v2029_v10 = vpack.c.bf16 %v2347_v17, %v159_v3  ;;  %v2133_v51 = vunpack.i.h.bf16 %v2131_v12 }
  0xa6   :  { %v158_v29 = vsel %vm3454_vm13, %v2128_v7, %v2132_v15  ;;  %1852 = vmatprep.subr.msk.mxu1 %vm2630_vm1, %v226_v24  ;;  %2022 = vmatprep.subr.msk.bf16.mxu0 %vm2635_vm14, %v2020_v52  ;;  %v3456_v14 = vsel %vm2682_vm9, 4294967295, %v3455_v14  ;;  %v3460_v56 = vsel %vm2702_vm4, 4294967295, %v3459_v56  ;;  %vm2711_vm7 = vcmp.ne.s32.totalorder %v80_v37, 127 }
  0xa7   :  { %v2026_v45 = vpack.c.bf16 %v2355_v19, %v158_v29  ;;  %1854 = vmatpush1.msk.msra.mxu1 %vm2651_vm6, %v227_v42  ;;  %2025 = vmatpush1.bf16.msk.msra.mxu0 %vm2656_vm2, %v2023_v16  ;;  %v207_v46 = vpop.permute.xlu1 %206  ;;  %v84_v19 = vand.u32 127, %v2646_v34  ;;  %v3463_v48 = vsel %vm2711_vm7, 4294967295, %v3462_v48  ;;  %vm3464_vm12 = vcmp.lt.s32.totalorder %v2389_v25, 127 }
  0xa8   :  { %v205_v60 = vpop.permute.xlu0 %204  ;;  %1855 = vmatmul.mubr.msk.f32.vlgmr.msra.gmra.mrb[2].mxu1 %vm3461_vm5, %v2512_v9  ;;  %vm3465_vm13 = vmmov %vm3464_vm12  ;;  %vm1988_vm5 = vcmp.ne.s32.totalorder %v85_v33, 0  ;;  %v87_v17 = vand.u32 127, %v2688_v43  ;;  %v86_v0 = vand.u32 127, %v70_v59  ;;  %v3469_v12 = vmov 0 }
  0xa9   :  { %v224_v62 = vsel %vm3464_vm12, %v205_v60, %v207_v46  ;;  %v225_v7 = vsel %vm3465_vm13, %v203_v1, %v205_v60  ;;  %2028 = vmatprep.subr.msk.bf16.mxu1 %vm2682_vm9, %v2026_v45  ;;  %674 = vmatprep.mubr.f32.mxu1 %v3400_v11  ;;  %vm1989_vm12 = vcmp.ne.s32.totalorder %v84_v19, 0  ;;  %vm3466_vm13 = vcmp.lt.s32.totalorder %v2389_v25, 1 }
  0xaa   :  { %1861 = vmatprep.subr.msk.mxu0 %vm2695_vm15, %v224_v62  ;;  %2031 = vmatpush1.bf16.msk.msra.mxu1 %vm2702_vm4, %v2029_v10  ;;  %v157_v2 = vsel %vm3466_vm13, %v2132_v15, %v2133_v51  ;;  %vm3467_vm9 = vcmask 195584   ;;  %vm3468_vm15 = vmmov %vm3466_vm13  ;;  %vm1992_vm13 = vcmp.ne.s32.totalorder %v87_v17, 0  ;;  %vm2764_vm2 = vcmp.ne.s32.totalorder %v82_v4, 127 }
  0xab   :  { %1863 = vmatpush1.msk.msra.mxu0 %vm2711_vm7, %v225_v7  ;;  %v209_v37 = vpop.permute.xlu1 %208  ;;  %vm2736_vm4 = vmpackc.low %vm3440_vm0, %vm1988_vm5  ;;  %v2035_v52 = vpack.c.bf16 %v2357_v20, %v157_v2  ;;  %vm3475_vm5 = vcmp.lt.s32.totalorder %v2389_v25, 1  ;;  %vm3479_vm6 = vcmp.lt.s32.totalorder %v2389_v25, 127  ;;  %v3485_v4 = vmov 0 }
  0xac   :  { %v148_v5 = vpop.permute.xlu0 %147  ;;  %1864 = vmatmul.mubr.msk.f32.vlgmr.msra.gmra.mrb[4].mxu0 %vm3467_vm9, %v2512_v9  ;;  %v3470_v12 = vsel %vm2736_vm4, 4294967295, %v3469_v12  ;;  %vm2743_vm7 = vmpackc.low %vm3440_vm0, %vm1989_vm12  ;;  %vm2750_vm9 = vcmp.ne.s32.totalorder %v83_v61, 127 }
  0xad   :  { %v156_v8 = vsel %vm3468_vm15, %v2133_v51, %v148_v5  ;;  %745 = vmatprep.mubr.f32.mxu0 %v3400_v11  ;;  %vm1993_vm15 = vcmp.ne.s32.totalorder %v86_v0, 0  ;;  %vm3476_vm12 = vmmov %vm3475_vm5 }
  0xae   :  { %v2032_v31 = vpack.c.bf16 %v2371_v22, %v156_v8 }
  0xaf   :  { %v150_v15 = vpop.permute.xlu1 %149 }
  0xb0   :  { %v154_v22 = vsel %vm3475_vm5, %v150_v15, %v2107_v47  ;;  %v155_v32 = vsel %vm3476_vm12, %v148_v5, %v150_v15  ;;  %v211_v16 = vpop.permute.xlu0 %210  ;;  %2034 = vmatprep.subr.msk.bf16.mxu0 %vm2736_vm4, %v2032_v31  ;;  %vm2775_vm5 = vmpackc.low %vm3440_vm0, %vm1992_vm13  ;;  %vm3487_vm13 = vcmask 195584  }
  0xb1   :  { %v2038_v55 = vpack.c.bf16 %v2310_v6, %v154_v22  ;;  %v2041_v41 = vpack.c.bf16 %v2377_v23, %v155_v32  ;;  %v222_v47 = vsel %vm3479_vm6, %v209_v37, %v211_v16  ;;  %2037 = vmatpush1.bf16.msk.msra.mxu0 %vm2743_vm7, %v2035_v52  ;;  %vm3482_vm12 = vmmov %vm3479_vm6  ;;  %v3483_v6 = vmov 0 }
  0xb2   :  { %v223_v58 = vsel %vm3482_vm12, %v207_v46, %v209_v37  ;;  %1870 = vmatprep.subr.msk.mxu1 %vm2750_vm9, %v222_v47  ;;  %vm2784_vm4 = vmpackc.low %vm3440_vm0, %vm1993_vm15  ;;  %vm2790_vm6 = vcmp.ne.s32.totalorder %v85_v33, 127  ;;  %vm2798_vm12 = vcmp.ne.s32.totalorder %v84_v19, 127  ;;  %vm3490_vm0 = vcmp.lt.s32.totalorder %v2389_v25, 127 }
  0xb3   :  { %v3484_v6 = vsel %vm2784_vm4, 4294967295, %v3483_v6  ;;  %1872 = vmatpush1.msk.msra.mxu1 %vm2764_vm2, %v223_v58  ;;  %v215_v23 = vpop.permute.xlu1 %214  ;;  %v3486_v4 = vsel %vm2790_vm6, 4294967295, %v3485_v4  ;;  %vm3491_vm15 = vmmov %vm3490_vm0 }
  0xb4   :  { %v213_v3 = vpop.permute.xlu0 %212  ;;  %1873 = vmatmul.mubr.msk.f32.vlgmr.msra.gmra.mrb[4].mxu1 %vm3487_vm13, %v2512_v9  ;;  %2040 = vmatprep.subr.msk.bf16.mxu1 %vm2775_vm5, %v2038_v55  ;;  %vm2813_vm13 = vcmp.ne.s32.totalorder %v87_v17, 127 }
  0xb5   :  { %v220_v42 = vsel %vm3490_vm0, %v213_v3, %v215_v23  ;;  %v221_v29 = vsel %vm3491_vm15, %v211_v16, %v213_v3  ;;  %2043 = vmatpush1.bf16.msk.msra.mxu1 %vm2784_vm4, %v2041_v41  ;;  %816 = vmatprep.mubr.f32.mxu1 %v3400_v11  ;;  %vm3494_vm0 = vcmask 195584   ;;  %vm2819_vm15 = vcmp.ne.s32.totalorder %v86_v0, 127 }
  0xb6   :  { %1879 = vmatprep.subr.msk.mxu0 %vm2790_vm6, %v220_v42  ;;  %vm3497_vm4 = vcmp.lt.s32.totalorder %v2389_v25, 127 }
  0xb7   :  { %1881 = vmatpush1.msk.msra.mxu0 %vm2798_vm12, %v221_v29  ;;  %vm3498_vm6 = vmmov %vm3497_vm4 }
  0xb8   :  { %v217_v43 = vpop.permute.xlu0 %216  ;;  %1882 = vmatmul.mubr.msk.f32.vlgmr.msra.gmra.mrb[6].mxu0 %vm3494_vm0, %v2512_v9 }
  0xb9   :  { %v219_v46 = vsel %vm3497_vm4, %v215_v23, %v217_v43  ;;  %v234_v19 = vsel %vm3498_vm6, %v217_v43, %v2502_v18  ;;  %1152 = vmatprep.mubr.f32.mxu0 %v3400_v11  ;;  %vm3500_vm4 = vcmp.lt.s32.totalorder %v2389_v25, 1 }
  0xba   :  { %1888 = vmatprep.subr.msk.mxu1 %vm2813_vm13, %v234_v19  ;;  %vm3501_vm6 = vmmov %vm3500_vm4 }
  0xbb   :  { %1890 = vmatpush1.msk.msra.mxu1 %vm2819_vm15, %v219_v46 }
  0xbc   :  { %1891 = vmatmul.mubr.msk.f32.vlgmr.msra.gmra.mrb[6].mxu1 %vm3494_vm0, %v2512_v9  ;;  %vm3502_vm0 = vmmov %vm3500_vm4 }
  0xbd   :  { %1223 = vmatprep.mubr.f32.mxu1 %v3400_v11 }
 0x16a   :  { %v2836_v59 = vpop.f32.mrb[0].mxu0 }
 0x16b   :  { %v840_v10 = vmul.f32 %v2836_v59, %v2836_v59  ;;  %v2840_v51 = vpop.f32.mrb[1].mxu0 }
 0x16c   :  { %v823_v18 = vadd.f32 %v2840_v51, %v2836_v59  ;;  %v841_v60 = vmul.f32 %v2840_v51, %v2840_v51 }
 0x16e   :  { %v856_v62 = vadd.f32 %v841_v60, %v840_v10 }
 0x16f   :  { %v2846_v7 = vpop.f32.mrb[0].mxu1 }
 0x170   :  { %v824_v9 = vadd.f32 %v823_v18, %v2846_v7  ;;  %v842_v17 = vmul.f32 %v2846_v7, %v2846_v7  ;;  %v2851_v37 = vpop.f32.mrb[1].mxu1 }
 0x171   :  { %v843_v0 = vmul.f32 %v2851_v37, %v2851_v37 }
 0x172   :  { %v857_v2 = vadd.f32 %v856_v62, %v842_v17  ;;  %v825_v5 = vadd.f32 %v824_v9, %v2851_v37 }
 0x173   :  { %v2856_v8 = vpop.f32.mrb[2].mxu0 }
 0x174   :  { %v858_v31 = vadd.f32 %v857_v2, %v843_v0  ;;  %v826_v52 = vadd.f32 %v825_v5, %v2856_v8  ;;  %v844_v15 = vmul.f32 %v2856_v8, %v2856_v8  ;;  %v2861_v22 = vpop.f32.mrb[3].mxu0 }
 0x175   :  { %v845_v32 = vmul.f32 %v2861_v22, %v2861_v22 }
 0x176   :  { %v859_v16 = vadd.f32 %v858_v31, %v844_v15  ;;  %v827_v55 = vadd.f32 %v826_v52, %v2861_v22 }
 0x178   :  { %v860_v41 = vadd.f32 %v859_v16, %v845_v32 }
 0x17b   :  { %v2866_v47 = vpop.f32.mrb[2].mxu1 }
 0x17c   :  { %v828_v58 = vadd.f32 %v827_v55, %v2866_v47  ;;  %v846_v23 = vmul.f32 %v2866_v47, %v2866_v47  ;;  %v2871_v3 = vpop.f32.mrb[3].mxu1 }
 0x17d   :  { %v847_v42 = vmul.f32 %v2871_v3, %v2871_v3 }
 0x17e   :  { %v861_v29 = vadd.f32 %v860_v41, %v846_v23  ;;  %v829_v43 = vadd.f32 %v828_v58, %v2871_v3 }
 0x17f   :  { %v2876_v46 = vpop.f32.mrb[4].mxu0 }
 0x180   :  { %v862_v19 = vadd.f32 %v861_v29, %v847_v42  ;;  %v830_v10 = vadd.f32 %v829_v43, %v2876_v46  ;;  %v848_v18 = vmul.f32 %v2876_v46, %v2876_v46  ;;  %v2881_v60 = vpop.f32.mrb[5].mxu0 }
 0x181   :  { %v849_v62 = vmul.f32 %v2881_v60, %v2881_v60 }
 0x182   :  { %v863_v9 = vadd.f32 %v862_v19, %v848_v18  ;;  %v831_v17 = vadd.f32 %v830_v10, %v2881_v60 }
 0x184   :  { %v864_v0 = vadd.f32 %v863_v9, %v849_v62 }
 0x187   :  { %v2886_v2 = vpop.f32.mrb[4].mxu1 }
 0x188   :  { %v832_v5 = vadd.f32 %v831_v17, %v2886_v2  ;;  %v850_v31 = vmul.f32 %v2886_v2, %v2886_v2  ;;  %v2891_v52 = vpop.f32.mrb[5].mxu1 }
 0x189   :  { %v851_v15 = vmul.f32 %v2891_v52, %v2891_v52 }
 0x18a   :  { %v865_v32 = vadd.f32 %v864_v0, %v850_v31  ;;  %v833_v16 = vadd.f32 %v832_v5, %v2891_v52 }
 0x18b   :  { %v2896_v55 = vpop.f32.mrb[6].mxu0 }
 0x18c   :  { %v866_v41 = vadd.f32 %v865_v32, %v851_v15  ;;  %v834_v58 = vadd.f32 %v833_v16, %v2896_v55  ;;  %v852_v23 = vmul.f32 %v2896_v55, %v2896_v55  ;;  %v2901_v42 = vpop.f32.mrb[7].mxu0  ;;  %v2244_v32 = vmov 0   ;;  %v918_v16 = vld [vmem:[%s3371_s3] sm:$0xff] }
 0x18d   :  { %v853_v29 = vmul.f32 %v2901_v42, %v2901_v42  ;;  %2134 = vset.pattern.permute.xlu0 %v2244_v32  ;;  %2135 = vset.pattern.permute.xlu1 %v2244_v32 }
 0x18e   :  { %v867_v43 = vadd.f32 %v866_v41, %v852_v23  ;;  %v835_v19 = vadd.f32 %v834_v58, %v2901_v42 }
 0x18f   :  { %v2906_v10 = vpop.f32.mrb[6].mxu1 }
 0x190   :  { %v854_v18 = vmul.f32 %v2906_v10, %v2906_v10  ;;  %v820_v62 = vpop.f32.mrb[7].mxu1  ;;  %v836_v9 = vadd.f32 %v835_v19, %v2906_v10  ;;  %v868_v17 = vadd.f32 %v867_v43, %v853_v29 }
 0x191   :  { %v855_v0 = vmul.f32 %v820_v62, %v820_v62 }
 0x192   :  { %v837_v5 = vadd.f32 %v836_v9, %v820_v62  ;;  %v869_v31 = vadd.f32 %v868_v17, %v854_v18 }
 0x194   :  { %838 = vadd.xlane.f32.xlu1 %v837_v5  ;;  %v870_v15 = vadd.f32 %v869_v31, %v855_v0 }
 0x196   :  { %871 = vadd.xlane.f32.xlu0 %v870_v15 }
 0x1a5   :  { %921 = vperm.xlu1 %2135, %v918_v16  }
 0x221   :  { %v839_v41 = vpop.xlane.xlu1 %838 }
 0x222   :  { %v2914_v58 = vmul.f32 0.00048828125, %v839_v41 }
 0x223   :  { %v872_v23 = vpop.xlane.xlu0 %871 }
 0x224   :  { %v874_v19 = vmul.f32 0.00048828125, %v872_v23  ;;  %v875_v29 = vmul.f32 %v2914_v58, %v2914_v58  ;;  %v884_v43 = vsub.f32 %v2851_v37, %v2914_v58  ;;  %v881_v18 = vsub.f32 %v2836_v59, %v2914_v58 }
 0x225   :  { %v882_v9 = vsub.f32 %v2840_v51, %v2914_v58  ;;  %v888_v17 = vsub.f32 %v2871_v3, %v2914_v58  ;;  %v889_v0 = vsub.f32 %v2876_v46, %v2914_v58  ;;  %v883_v5 = vsub.f32 %v2846_v7, %v2914_v58 }
 0x226   :  { %v876_v31 = vsub.f32 %v874_v19, %v875_v29  ;;  %v896_v15 = vsub.f32 %v820_v62, %v2914_v58  ;;  %v887_v37 = vsub.f32 %v2866_v47, %v2914_v58  ;;  %v885_v59 = vsub.f32 %v2856_v8, %v2914_v58 }
 0x227   :  { %v892_v51 = vsub.f32 %v2891_v52, %v2914_v58  ;;  %v893_v3 = vsub.f32 %v2896_v55, %v2914_v58  ;;  %v891_v46 = vsub.f32 %v2886_v2, %v2914_v58  ;;  %v886_v7 = vsub.f32 %v2861_v22, %v2914_v58  ;;  %v877_v52 = vld [vmem:[%s3370_s2] sm:$0xff]  ;;  %v2954_v22 = vpop.permute.xlu1 %921 }
 0x228   :  { %v878_v32 = vadd.f32 1e-05, %v876_v31  ;;  %v895_v62 = vsub.f32 %v2906_v10, %v2914_v58  ;;  %v890_v47 = vsub.f32 %v2881_v60, %v2914_v58 }
 0x22a   :  { %2171 = vrsqrt.f32 %v878_v32 }
 0x234   :  { %v2172_v55 = vpop.eup %2171 }
 0x235   :  { %v880_v2 = vmul.f32 %v2172_v55, %v877_v52 }
 0x237   :  { %899 = vperm.xlu0 %2134, %v880_v2  }
 0x2b6   :  { %v2952_v16 = vpop.permute.xlu0 %899 }
 0x2b7   :  { %v905_v41 = vmul.f32 %v2952_v16, %v884_v43  ;;  %v902_v23 = vmul.f32 %v2952_v16, %v881_v18  ;;  %v903_v19 = vmul.f32 %v2952_v16, %v882_v9  ;;  %v909_v29 = vmul.f32 %v2952_v16, %v888_v17 }
 0x2b8   :  { %v910_v31 = vmul.f32 %v2952_v16, %v889_v0  ;;  %v904_v32 = vmul.f32 %v2952_v16, %v883_v5  ;;  %v917_v11 = vmul.f32 %v2952_v16, %v896_v15  ;;  %v908_v0 = vmul.f32 %v2952_v16, %v887_v37 }
 0x2b9   :  { %v927_v52 = vadd.f32 %v2954_v22, %v905_v41  ;;  %v924_v55 = vadd.f32 %v2954_v22, %v902_v23  ;;  %v925_v2 = vadd.f32 %v2954_v22, %v903_v19  ;;  %v931_v43 = vadd.f32 %v2954_v22, %v909_v29 }
 0x2ba   :  { %v932_v18 = vadd.f32 %v2954_v22, %v910_v31  ;;  %v926_v9 = vadd.f32 %v2954_v22, %v904_v32  ;;  %v939_v17 = vadd.f32 %v2954_v22, %v917_v11  ;;  %v906_v37 = vmul.f32 %v2952_v16, %v885_v59 }
 0x2bb   :  { %v2971_v8 = vmax.f32 %v927_v52, 0.0  ;;  %v2973_v5 = vmax.f32 %v924_v55, 0.0  ;;  %v2975_v15 = vmax.f32 %v925_v2, 0.0  ;;  %v2977_v41 = vmax.f32 %v931_v43, 0.0 }
 0x2bc   :  { %v2979_v23 = vmax.f32 %v932_v18, 0.0  ;;  %v2985_v29 = vmax.f32 %v926_v9, 0.0  ;;  %v2987_v11 = vmax.f32 %v939_v17, 0.0  ;;  %v930_v31 = vadd.f32 %v2954_v22, %v908_v0 }
 0x2bd   :  { %1027 = vrot.lane.b32.xlu0 %v2971_v8, %s2242_s13  ;;  %v2136_v19 = vpack.i.bf16 %v2975_v15, %v2973_v5  ;;  %v928_v52 = vadd.f32 %v2954_v22, %v906_v37  ;;  %v913_v55 = vmul.f32 %v2952_v16, %v892_v51  ;;  %v914_v2 = vmul.f32 %v2952_v16, %v893_v3 }
 0x2be   :  { %v2156_v32 = vpack.i.bf16 %v2979_v23, %v2977_v41  ;;  %v2141_v43 = vpack.i.bf16 %v2985_v29, %v2987_v11  ;;  %v3003_v59 = vmax.f32 %v930_v31, 0.0  ;;  %v907_v3 = vmul.f32 %v2952_v16, %v886_v7 }
 0x2bf   :  { %2137 = vrot.lane.b32.xlu1 %v2136_v19, %s2240_s0  ;;  %v3000_v18 = vmax.f32 %v928_v52, 0.0  ;;  %v935_v9 = vadd.f32 %v2954_v22, %v913_v55  ;;  %v936_v17 = vadd.f32 %v2954_v22, %v914_v2  ;;  %v912_v37 = vmul.f32 %v2952_v16, %v891_v46 }
 0x2c0   :  { %v929_v31 = vadd.f32 %v2954_v22, %v907_v3  ;;  %v916_v55 = vmul.f32 %v2952_v16, %v895_v62  ;;  %v911_v10 = vmul.f32 %v2952_v16, %v890_v47  ;;  %v3499_v47 = vsub.f32 %v2901_v42, %v2914_v58 }
 0x2c1   :  { %2157 = vrot.lane.b32.xlu0 %v2156_v32, %s2240_s0  ;;  %v2146_v51 = vpack.i.bf16 %v3000_v18, %v2971_v8  ;;  %v3013_v0 = vmax.f32 %v935_v9, 0.0  ;;  %v3015_v19 = vmax.f32 %v936_v17, 0.0  ;;  %v934_v7 = vadd.f32 %v2954_v22, %v912_v37 }
 0x2c2   :  { %v3027_v52 = vmax.f32 %v929_v31, 0.0  ;;  %v933_v9 = vadd.f32 %v2954_v22, %v911_v10 }
 0x2c3   :  { %2142 = vrot.lane.b32.xlu1 %v2141_v43, %s2240_s0  ;;  %v2166_v32 = vpack.i.bf16 %v3015_v19, %v3013_v0  ;;  %v3031_v46 = vmax.f32 %v934_v7, 0.0  ;;  %v938_v43 = vadd.f32 %v2954_v22, %v916_v55 }
 0x2c4   :  { %v2151_v2 = vpack.i.bf16 %v3003_v59, %v3027_v52  ;;  %v3060_v17 = vmax.f32 %v933_v9, 0.0 }
 0x2c5   :  { %1033 = vrot.lane.b32.xlu0 %v3003_v59, %s2242_s13  ;;  %v3051_v62 = vmax.f32 %v938_v43, 0.0 }
 0x2c6   :  { %v2161_v60 = vpack.i.bf16 %v3031_v46, %v3060_v17 }
 0x2c7   :  { %2147 = vrot.lane.b32.xlu1 %v2146_v51, %s2240_s0  ;;  %v915_v51 = vmul.f32 %v2952_v16, %v3499_v47 }
 0x2c9   :  { %1035 = vrot.lane.b32.xlu0 %v2977_v41, %s2242_s13  ;;  %v937_v3 = vadd.f32 %v2954_v22, %v915_v51 }
 0x2cb   :  { %1023 = vrot.lane.b32.xlu1 %v2975_v15, %s2242_s13  ;;  %v3076_v37 = vmax.f32 %v937_v3, 0.0 }
 0x2cd   :  { %2167 = vrot.lane.b32.xlu0 %v2166_v32, %s2240_s0 }
 0x2cf   :  { %1025 = vrot.lane.b32.xlu1 %v2985_v29, %s2242_s13 }
 0x2d1   :  { %1041 = vrot.lane.b32.xlu0 %v3031_v46, %s2242_s13 }
 0x2d3   :  { %2152 = vrot.lane.b32.xlu1 %v2151_v2, %s2240_s0 }
 0x2d5   :  { %1043 = vrot.lane.b32.xlu0 %v3013_v0, %s2242_s13 }
 0x2d7   :  { %1021 = vrot.lane.b32.xlu1 %v2973_v5, %s2242_s13 }
 0x2d9   :  { %985 = vrot.lane.b32.xlu0 %v3051_v62, %s2240_s0 }
 0x2db   :  { %1029 = vrot.lane.b32.xlu1 %v3000_v18, %s2242_s13 }
 0x2dd   :  { %1049 = vrot.lane.b32.xlu0 %v3051_v62, %s2242_s13 }
 0x2df   :  { %1031 = vrot.lane.b32.xlu1 %v3027_v52, %s2242_s13 }
 0x2e3   :  { %2162 = vrot.lane.b32.xlu1 %v2161_v60, %s2240_s0 }
 0x2e7   :  { %1037 = vrot.lane.b32.xlu1 %v2979_v23, %s2242_s13 }
 0x2eb   :  { %1039 = vrot.lane.b32.xlu1 %v3060_v17, %s2242_s13 }
 0x2ef   :  { %983 = vrot.lane.b32.xlu1 %v3076_v37, %s2240_s0 }
 0x2f3   :  { %1045 = vrot.lane.b32.xlu1 %v3015_v19, %s2242_s13 }
 0x2f7   :  { %1047 = vrot.lane.b32.xlu1 %v3076_v37, %s2242_s13 }
 0x2fb   :  { %1051 = vrot.lane.b32.xlu1 %v2987_v11, %s2242_s13 }
 0x32f   :  { %v1028_v55 = vpop.permute.xlu0 %1027 }
 0x331   :  { %v2138_v42 = vpop.permute.xlu1 %2137 }
 0x332   :  { %v2140_v58 = vunpack.i.h.bf16 %v2138_v42  ;;  %v2139_v16 = vunpack.i.l.bf16 %v2138_v42 }
 0x333   :  { %v2158_v40 = vpop.permute.xlu0 %2157 }
 0x334   :  { %v1003_v22 = vsel %vm3500_vm4, %v2139_v16, %v2140_v58  ;;  %vm3503_vm4 = vmmov %vm3502_vm0 }
 0x335   :  { %v2044_v31 = vpack.c.bf16 %v2975_v15, %v1003_v22  ;;  %v3089_v32 = vpop.permute.xlu1 %2142 }
 0x336   :  { %v2144_v7 = vunpack.i.l.bf16 %v3089_v32  ;;  %v2145_v2 = vunpack.i.h.bf16 %v3089_v32 }
 0x337   :  { %2046 = vmatprep.subr.msk.bf16.mxu0 %vm2410_vm3, %v2044_v31  ;;  %vm3504_vm3 = vcmp.lt.s32.totalorder %v2389_v25, 127 }
 0x338   :  { %v1004_v43 = vsel %vm3501_vm6, %v2144_v7, %v2139_v16  ;;  %v1002_v15 = vsel %vm3502_vm0, %v2140_v58, %v2145_v2  ;;  %v1034_v58 = vpop.permute.xlu0 %1033  ;;  %vm3506_vm6 = vmmov %vm3502_vm0 }
 0x339   :  { %v2047_v10 = vpack.c.bf16 %v2973_v5, %v1004_v43  ;;  %v2148_v9 = vpop.permute.xlu1 %2147  ;;  %v2053_v42 = vpack.c.bf16 %v2985_v29, %v1002_v15 }
 0x33a   :  { %v2149_v60 = vunpack.i.l.bf16 %v2148_v9  ;;  %v2150_v16 = vunpack.i.h.bf16 %v2148_v9 }
 0x33b   :  { %2049 = vmatpush1.bf16.msk.msra.mxu0 %vm2437_vm8, %v2047_v10  ;;  %vm3505_vm8 = vnez %v3411_v50  ;;  %v3126_v50 = vld [vmem:[%s3372_s4] sm:$0xff]  ;;  %v2159_v10 = vunpack.i.l.bf16 %v2158_v40 }
 0x33c   :  { %v1001_v47 = vsel %vm3503_vm4, %v2145_v2, %v2149_v60  ;;  %v1000_v29 = vsel %vm3506_vm6, %v2149_v60, %v2150_v16  ;;  %v1036_v63 = vpop.permute.xlu0 %1035  ;;  %vm3512_vm6 = vmmov %vm3503_vm4 }
 0x33d   :  { %v2050_v51 = vpack.c.bf16 %v2971_v8, %v1001_v47  ;;  %v1024_v3 = vpop.permute.xlu1 %1023  ;;  %v2059_v60 = vpack.c.bf16 %v3000_v18, %v1000_v29  ;;  %v3514_v18 = vmov 0.0  }
 0x33f   :  { %2052 = vmatprep.subr.msk.bf16.mxu1 %vm2458_vm10, %v2050_v51  ;;  %vm3507_vm10 = vmmov %vm3502_vm0  ;;  %vm3509_vm0 = vcmp.ne.s32.totalorder %v2389_v25, 127 }
 0x340   :  { %2055 = vmatpush1.bf16.msk.msra.mxu1 %vm2469_vm11, %v2053_v42  ;;  %vm3508_vm11 = vmmov %vm3504_vm3 }
 0x341   :  { %v1026_v5 = vpop.permute.xlu1 %1025 }
 0x342   :  { %v1066_v49 = vsel %vm3504_vm3, %v1024_v3, %v1026_v5  ;;  %vm3510_vm3 = vnez %v3419_v21 }
 0x343   :  { %1897 = vmatprep.subr.msk.mxu0 %vm3505_vm8, %v1066_v49  ;;  %vm3511_vm8 = vcmask 195584  }
 0x345   :  { %v2153_v22 = vpop.permute.xlu1 %2152 }
 0x346   :  { %v2154_v8 = vunpack.i.l.bf16 %v2153_v22  ;;  %v2155_v31 = vunpack.i.h.bf16 %v2153_v22 }
 0x348   :  { %v999_v57 = vsel %vm3507_vm10, %v2150_v16, %v2154_v8  ;;  %v998_v15 = vsel %vm3512_vm6, %v2154_v8, %v2155_v31  ;;  %vm3513_vm10 = vnez %v3421_v30  ;;  %vm3519_vm6 = vcmask 195584  }
 0x349   :  { %v2056_v2 = vpack.c.bf16 %v3027_v52, %v999_v57  ;;  %v3121_v43 = vpop.permute.xlu1 %1021  ;;  %v997_v52 = vsel %vm3503_vm4, %v2155_v31, %v2159_v10  ;;  %vm3516_vm4 = vnez %v3423_v35  ;;  %v2065_v49 = vpack.c.bf16 %v3003_v59, %v998_v15 }
 0x34a   :  { %v1067_v9 = vsel %vm3508_vm11, %v3121_v43, %v1024_v3  ;;  %v2168_v3 = vpop.permute.xlu0 %2167  ;;  %v2062_v42 = vpack.c.bf16 %v2977_v41, %v997_v52  ;;  %v2160_v35 = vunpack.i.h.bf16 %v2158_v40 }
 0x34b   :  { %1899 = vmatpush1.msk.msra.mxu0 %vm3509_vm0, %v1067_v9  ;;  %vm3515_vm0 = vmmov %vm3508_vm11  ;;  %v2169_v59 = vunpack.i.l.bf16 %v2168_v3 }
 0x34c   :  { %2058 = vmatprep.subr.msk.bf16.mxu0 %vm3510_vm3, %v2056_v2  ;;  %1900 = vmatmul.mubr.msk.f32.vlgmr.msra.gmra.mrb[8].mxu0 %vm3511_vm8, %v3126_v50  ;;  %v1065_v21 = vsel %vm3515_vm0, %v1026_v5, %v1028_v55  ;;  %vm3517_vm3 = vnez %v3425_v39  ;;  %vm3518_vm8 = vnez %v3427_v44 }
 0x34d   :  { %v1030_v47 = vpop.permute.xlu1 %1029  ;;  %2061 = vmatpush1.bf16.msk.msra.mxu0 %vm3513_vm10, %v2059_v60  ;;  %1294 = vmatprep.mubr.f32.mxu0 %v3514_v18  ;;  %vm3520_vm10 = vmmov %vm3515_vm0 }
 0x34e   :  { %v1064_v51 = vsel %vm3508_vm11, %v1028_v55, %v1030_v47  ;;  %vm3521_vm11 = vmmov %vm3515_vm0  ;;  %vm3522_vm0 = vnez %v3431_v54  ;;  %v1042_v39 = vpop.permute.xlu0 %1041 }
 0x34f   :  { %1906 = vmatprep.subr.msk.mxu1 %vm3516_vm4, %v1064_v51  ;;  %vm3523_vm4 = vnez %v3429_v53 }
 0x350   :  { %1908 = vmatpush1.msk.msra.mxu1 %vm3517_vm3, %v1065_v21  ;;  %vm3524_vm3 = vnez %v3433_v36 }
 0x351   :  { %v1032_v30 = vpop.permute.xlu1 %1031  ;;  %2064 = vmatprep.subr.msk.bf16.mxu1 %vm3518_vm8, %v2062_v42  ;;  %1909 = vmatmul.mubr.msk.f32.vlgmr.msra.gmra.mrb[8].mxu1 %vm3519_vm6, %v3126_v50  ;;  %vm3525_vm8 = vmmov %vm3519_vm6  ;;  %vm3526_vm6 = vcmp.lt.s32.totalorder %v2389_v25, 1 }
 0x352   :  { %v1062_v55 = vsel %vm3520_vm10, %v1032_v30, %v1034_v58  ;;  %v1063_v41 = vsel %vm3521_vm11, %v1030_v47, %v1032_v30  ;;  %2067 = vmatpush1.bf16.msk.msra.mxu1 %vm3522_vm0, %v2065_v49  ;;  %1365 = vmatprep.mubr.f32.mxu1 %v3514_v18  ;;  %v996_v54 = vsel %vm3526_vm6, %v2159_v10, %v2160_v35  ;;  %vm3527_vm10 = vmmov %vm3526_vm6  ;;  %v1044_v2 = vpop.permute.xlu0 %1043 }
 0x353   :  { %1915 = vmatprep.subr.msk.mxu0 %vm3523_vm4, %v1062_v55  ;;  %vm3528_vm11 = vmmov %vm3526_vm6  ;;  %v2071_v29 = vpack.c.bf16 %v2979_v23, %v996_v54  ;;  %vm3530_vm4 = vcmp.lt.s32.totalorder %v2389_v25, 127  ;;  %v2170_v23 = vunpack.i.h.bf16 %v2168_v3 }
 0x354   :  { %1917 = vmatpush1.msk.msra.mxu0 %vm3524_vm3, %v1063_v41  ;;  %vm3529_vm0 = vmmov %vm3526_vm6  ;;  %vm3533_vm6 = vnez %v3448_v28 }
 0x355   :  { %v2163_v44 = vpop.permute.xlu1 %2162  ;;  %1918 = vmatmul.mubr.msk.f32.vlgmr.msra.gmra.mrb[10].mxu0 %vm3525_vm8, %v3126_v50  ;;  %vm3531_vm3 = vmmov %vm3530_vm4  ;;  %vm3532_vm8 = vnez %v3446_v38 }
 0x356   :  { %v2165_v5 = vunpack.i.h.bf16 %v2163_v44  ;;  %v2164_v16 = vunpack.i.l.bf16 %v2163_v44  ;;  %1436 = vmatprep.mubr.f32.mxu0 %v3514_v18  ;;  %v1061_v57 = vsel %vm3531_vm3, %v1034_v58, %v1036_v63  ;;  %v986_v28 = vpop.permute.xlu0 %985 }
 0x358   :  { %v993_v53 = vsel %vm3527_vm10, %v2165_v5, %v2169_v59  ;;  %v995_v36 = vsel %vm3528_vm11, %v2160_v35, %v2164_v16  ;;  %v994_v40 = vsel %vm3529_vm0, %v2164_v16, %v2165_v5  ;;  %vm3534_vm10 = vnez %v3456_v14 }
 0x359   :  { %v2068_v22 = vpack.c.bf16 %v3060_v17, %v995_v36  ;;  %v1038_v8 = vpop.permute.xlu1 %1037  ;;  %v2074_v10 = vpack.c.bf16 %v3013_v0, %v993_v53  ;;  %v2077_v17 = vpack.c.bf16 %v3031_v46, %v994_v40  ;;  %vm3535_vm11 = vcmask 195584  }
 0x35a   :  { %v1060_v31 = vsel %vm3530_vm4, %v1036_v63, %v1038_v8  ;;  %vm3538_vm0 = vnez %v3460_v56  ;;  %vm3539_vm4 = vnez %v3458_v13 }
 0x35b   :  { %1924 = vmatprep.subr.msk.mxu1 %vm2630_vm1, %v1060_v31  ;;  %2070 = vmatprep.subr.msk.bf16.mxu0 %vm2635_vm14, %v2068_v22  ;;  %vm3536_vm1 = vmmov %vm3531_vm3  ;;  %vm3540_vm3 = vnez %v3463_v48 }
 0x35c   :  { %1926 = vmatpush1.msk.msra.mxu1 %vm3532_vm8, %v1061_v57  ;;  %2073 = vmatpush1.bf16.msk.msra.mxu0 %vm3533_vm6, %v2071_v29  ;;  %vm3537_vm14 = vmmov %vm3536_vm1  ;;  %vm3541_vm8 = vcmp.lt.s32.totalorder %v2389_v25, 1 }
 0x35d   :  { %v1040_v9 = vpop.permute.xlu1 %1039  ;;  %2076 = vmatprep.subr.msk.bf16.mxu1 %vm3534_vm10, %v2074_v10  ;;  %1927 = vmatmul.mubr.msk.f32.vlgmr.msra.gmra.mrb[10].mxu1 %vm3535_vm11, %v3126_v50  ;;  %v992_v38 = vsel %vm3541_vm8, %v2169_v59, %v2170_v23  ;;  %vm3542_vm6 = vmmov %vm3535_vm11 }
 0x35e   :  { %v1058_v26 = vsel %vm3536_vm1, %v1040_v9, %v1042_v39  ;;  %v1059_v27 = vsel %vm3537_vm14, %v1038_v8, %v1040_v9  ;;  %2079 = vmatpush1.bf16.msk.msra.mxu1 %vm3538_vm0, %v2077_v17  ;;  %1507 = vmatprep.mubr.f32.mxu1 %v3514_v18  ;;  %vm3543_vm10 = vmmov %vm3541_vm8  ;;  %v2083_v13 = vpack.c.bf16 %v3015_v19, %v992_v38  ;;  %vm3547_vm0 = vcmp.lt.s32.totalorder %v2389_v25, 127 }
 0x35f   :  { %1933 = vmatprep.subr.msk.mxu0 %vm3539_vm4, %v1058_v26  ;;  %vm3544_vm11 = vmmov %vm3541_vm8  ;;  %vm3546_vm14 = vnez %v3470_v12  ;;  %v1050_v12 = vpop.permute.xlu0 %1049 }
 0x360   :  { %1935 = vmatpush1.msk.msra.mxu0 %vm3540_vm3, %v1059_v27  ;;  %v989_v48 = vsel %vm3544_vm11, %v986_v28, %v2144_v7  ;;  %vm3545_vm1 = vmmov %vm3541_vm8 }
 0x361   :  { %v984_v14 = vpop.permute.xlu1 %983  ;;  %1936 = vmatmul.mubr.msk.f32.vlgmr.msra.gmra.mrb[12].mxu0 %vm3542_vm6, %v3126_v50  ;;  %vm3548_vm4 = vmmov %vm3547_vm0 }
 0x362   :  { %v991_v56 = vsel %vm3543_vm10, %v2170_v23, %v984_v14  ;;  %1578 = vmatprep.mubr.f32.mxu0 %v3514_v18  ;;  %v990_v46 = vsel %vm3545_vm1, %v984_v14, %v986_v28  ;;  %v1057_v19 = vsel %vm3548_vm4, %v1042_v39, %v1044_v2  ;;  %vm3549_vm3 = vmmov %vm3542_vm6 }
 0x363   :  { %v2080_v0 = vpack.c.bf16 %v3076_v37, %v991_v56  ;;  %v2086_v37 = vpack.c.bf16 %v2987_v11, %v989_v48  ;;  %v2089_v32 = vpack.c.bf16 %v3051_v62, %v990_v46  ;;  %vm3551_vm8 = vmmov %vm3547_vm0 }
 0x364   :  { %vm3555_vm6 = vmmov %vm3547_vm0 }
 0x365   :  { %v1046_v58 = vpop.permute.xlu1 %1045  ;;  %2082 = vmatprep.subr.msk.bf16.mxu0 %vm3546_vm14, %v2080_v0  ;;  %vm3556_vm10 = vmmov %vm3547_vm0 }
 0x366   :  { %v1056_v63 = vsel %vm3547_vm0, %v1044_v2, %v1046_v58  ;;  %2085 = vmatpush1.bf16.msk.msra.mxu0 %vm2743_vm7, %v2083_v13  ;;  %vm3550_vm7 = vmmov %vm3547_vm0 }
 0x367   :  { %1942 = vmatprep.subr.msk.mxu1 %vm2750_vm9, %v1056_v63  ;;  %vm3552_vm9 = vnez %v3484_v6  ;;  %vm3557_vm11 = vmmov %vm3549_vm3 }
 0x368   :  { %1944 = vmatpush1.msk.msra.mxu1 %vm2764_vm2, %v1057_v19  ;;  %vm3553_vm2 = vnez %v3486_v4 }
 0x369   :  { %v1048_v7 = vpop.permute.xlu1 %1047  ;;  %1945 = vmatmul.mubr.msk.f32.vlgmr.msra.gmra.mrb[12].mxu1 %vm3549_vm3, %v3126_v50  ;;  %2088 = vmatprep.subr.msk.bf16.mxu1 %vm2775_vm5, %v2086_v37  ;;  %vm3554_vm5 = vmmov %vm3549_vm3 }
 0x36a   :  { %v1054_v34 = vsel %vm3550_vm7, %v1048_v7, %v1050_v12  ;;  %v1055_v1 = vsel %vm3551_vm8, %v1046_v58, %v1048_v7  ;;  %2091 = vmatpush1.bf16.msk.msra.mxu1 %vm3552_vm9, %v2089_v32  ;;  %1649 = vmatprep.mubr.f32.mxu1 %v3514_v18 }
 0x36b   :  { %1951 = vmatprep.subr.msk.mxu0 %vm3553_vm2, %v1054_v34 }
 0x36c   :  { %1953 = vmatpush1.msk.msra.mxu0 %vm2798_vm12, %v1055_v1 }
 0x36d   :  { %v1052_v20 = vpop.permute.xlu1 %1051  ;;  %1954 = vmatmul.mubr.msk.f32.vlgmr.msra.gmra.mrb[14].mxu0 %vm3554_vm5, %v3126_v50 }
 0x36e   :  { %v1053_v61 = vsel %vm3555_vm6, %v1050_v12, %v1052_v20  ;;  %v1068_v6 = vsel %vm3556_vm10, %v1052_v20, %v3121_v43 }
 0x36f   :  { %1960 = vmatprep.subr.msk.mxu1 %vm2813_vm13, %v1068_v6 }
 0x370   :  { %1962 = vmatpush1.msk.msra.mxu1 %vm2819_vm15, %v1053_v61  ;;  %v1751_v61 = vld [vmem:[%s3374_s6] sm:$0xff] }
 0x371   :  { %1963 = vmatmul.mubr.msk.f32.vlgmr.msra.gmra.mrb[14].mxu1 %vm3557_vm11, %v3126_v50 }
 0x41f   :  { %v3269_v4 = vpop.f32.mrb[8].mxu0 }
 0x420   :  { %v1673_v24 = vmul.f32 %v3269_v4, %v3269_v4  ;;  %v3273_v11 = vpop.f32.mrb[9].mxu0 }
 0x421   :  { %v1656_v25 = vadd.f32 %v3273_v11, %v3269_v4  ;;  %v1674_v33 = vmul.f32 %v3273_v11, %v3273_v11 }
 0x423   :  { %v1689_v62 = vadd.f32 %v1674_v33, %v1673_v24 }
 0x424   :  { %v3279_v43 = vpop.f32.mrb[8].mxu1 }
 0x425   :  { %v1657_v45 = vadd.f32 %v1656_v25, %v3279_v43  ;;  %v1675_v50 = vmul.f32 %v3279_v43, %v3279_v43  ;;  %v3284_v60 = vpop.f32.mrb[9].mxu1 }
 0x426   :  { %v1676_v52 = vmul.f32 %v3284_v60, %v3284_v60 }
 0x427   :  { %v1690_v15 = vadd.f32 %v1689_v62, %v1675_v50  ;;  %v1658_v47 = vadd.f32 %v1657_v45, %v3284_v60 }
 0x428   :  { %v3289_v18 = vpop.f32.mrb[10].mxu0 }
 0x429   :  { %v1691_v51 = vadd.f32 %v1690_v15, %v1676_v52  ;;  %v1659_v3 = vadd.f32 %v1658_v47, %v3289_v18  ;;  %v1677_v21 = vmul.f32 %v3289_v18, %v3289_v18  ;;  %v3294_v42 = vpop.f32.mrb[11].mxu0 }
 0x42a   :  { %v1678_v49 = vmul.f32 %v3294_v42, %v3294_v42 }
 0x42b   :  { %v1692_v30 = vadd.f32 %v1691_v51, %v1677_v21  ;;  %v1660_v55 = vadd.f32 %v1659_v3, %v3294_v42 }
 0x42d   :  { %v1693_v41 = vadd.f32 %v1692_v30, %v1678_v49 }
 0x430   :  { %v3299_v35 = vpop.f32.mrb[10].mxu1 }
 0x431   :  { %v1661_v39 = vadd.f32 %v1660_v55, %v3299_v35  ;;  %v1679_v44 = vmul.f32 %v3299_v35, %v3299_v35  ;;  %v3304_v59 = vpop.f32.mrb[11].mxu1 }
 0x432   :  { %v1680_v5 = vmul.f32 %v3304_v59, %v3304_v59 }
 0x433   :  { %v1694_v16 = vadd.f32 %v1693_v41, %v1679_v44  ;;  %v1662_v54 = vadd.f32 %v1661_v39, %v3304_v59 }
 0x434   :  { %v3309_v53 = vpop.f32.mrb[12].mxu0 }
 0x435   :  { %v1695_v36 = vadd.f32 %v1694_v16, %v1680_v5  ;;  %v1663_v40 = vadd.f32 %v1662_v54, %v3309_v53  ;;  %v1681_v22 = vmul.f32 %v3309_v53, %v3309_v53  ;;  %v3314_v8 = vpop.f32.mrb[13].mxu0 }
 0x436   :  { %v1682_v29 = vmul.f32 %v3314_v8, %v3314_v8 }
 0x437   :  { %v1696_v31 = vadd.f32 %v1695_v36, %v1681_v22  ;;  %v1664_v57 = vadd.f32 %v1663_v40, %v3314_v8 }
 0x439   :  { %v1697_v2 = vadd.f32 %v1696_v31, %v1682_v29 }
 0x43c   :  { %v3319_v10 = vpop.f32.mrb[12].mxu1 }
 0x43d   :  { %v1665_v17 = vadd.f32 %v1664_v57, %v3319_v10  ;;  %v1683_v23 = vmul.f32 %v3319_v10, %v3319_v10  ;;  %v3324_v9 = vpop.f32.mrb[13].mxu1 }
 0x43e   :  { %v1684_v26 = vmul.f32 %v3324_v9, %v3324_v9 }
 0x43f   :  { %v1698_v27 = vadd.f32 %v1697_v2, %v1683_v23  ;;  %v1666_v38 = vadd.f32 %v1665_v17, %v3324_v9 }
 0x440   :  { %v3329_v28 = vpop.f32.mrb[14].mxu0 }
 0x441   :  { %v1699_v14 = vadd.f32 %v1698_v27, %v1684_v26  ;;  %v1667_v56 = vadd.f32 %v1666_v38, %v3329_v28  ;;  %v1685_v0 = vmul.f32 %v3329_v28, %v3329_v28  ;;  %v1582_v13 = vpop.f32.mrb[15].mxu0 }
 0x442   :  { %v1686_v48 = vmul.f32 %v1582_v13, %v1582_v13 }
 0x443   :  { %v1700_v46 = vadd.f32 %v1699_v14, %v1685_v0  ;;  %v1668_v58 = vadd.f32 %v1667_v56, %v1582_v13 }
 0x444   :  { %v1651_v63 = vpop.f32.mrb[14].mxu1 }
 0x445   :  { %v1701_v19 = vadd.f32 %v1700_v46, %v1686_v48  ;;  %v1687_v37 = vmul.f32 %v1651_v63, %v1651_v63  ;;  %v1653_v32 = vpop.f32.mrb[15].mxu1  ;;  %v1669_v12 = vadd.f32 %v1668_v58, %v1651_v63 }
 0x446   :  { %v1688_v7 = vmul.f32 %v1653_v32, %v1653_v32 }
 0x447   :  { %v1670_v34 = vadd.f32 %v1669_v12, %v1653_v32  ;;  %v1702_v1 = vadd.f32 %v1701_v19, %v1687_v37 }
 0x449   :  { %1671 = vadd.xlane.f32.xlu0 %v1670_v34  ;;  %v1703_v20 = vadd.f32 %v1702_v1, %v1688_v7  ;;  %v2175_v34 = vld [vmem:[#allocation2] sm:$0xff] }
 0x44b   :  { %1704 = vadd.xlane.f32.xlu1 %v1703_v20  ;;  %v2176_v20 = vld [vmem:[#allocation2 + $0x8] sm:$0xff] }
 0x45c   :  { %1754 = vperm.xlu1 %2135, %v1751_v61  }
 0x4d6   :  { %v1672_v6 = vpop.xlane.xlu0 %1671 }
 0x4d7   :  { %v1706_v24 = vmul.f32 0.00048828125, %v1672_v6  ;;  %v2177_v6 = vld [vmem:[#allocation2 + $0x10] sm:$0xff] }
 0x4d8   :  { %v1705_v25 = vpop.xlane.xlu1 %1704 }
 0x4d9   :  { %v1707_v33 = vmul.f32 0.00048828125, %v1705_v25  ;;  %v1708_v62 = vmul.f32 %v1706_v24, %v1706_v24  ;;  %v1714_v45 = vsub.f32 %v3269_v4, %v1706_v24  ;;  %v1715_v50 = vsub.f32 %v3273_v11, %v1706_v24  ;;  %v2178_v25 = vld [vmem:[#allocation2 + $0x18] sm:$0xff] }
 0x4da   :  { %v1716_v52 = vsub.f32 %v3279_v43, %v1706_v24  ;;  %v1717_v15 = vsub.f32 %v3284_v60, %v1706_v24  ;;  %v1718_v47 = vsub.f32 %v3289_v18, %v1706_v24  ;;  %v1719_v51 = vsub.f32 %v3294_v42, %v1706_v24  ;;  %v1710_v42 = vld [vmem:[%s3373_s5] sm:$0xff]  ;;  %s2245_s5 = smov [#allocation5]  }
 0x4db   :  { %v1709_v3 = vsub.f32 %v1707_v33, %v1708_v62  ;;  %v1720_v21 = vsub.f32 %v3299_v35, %v1706_v24  ;;  %v1721_v49 = vsub.f32 %v3304_v59, %v1706_v24  ;;  %v1722_v30 = vsub.f32 %v3309_v53, %v1706_v24  ;;  %s3353_s21 = sshll.u32 %s2245_s5, 4  ;;  %v2179_v62 = vld [vmem:[#allocation2 + $0x20] sm:$0xff]  ;;  %s1812_s21 = int_to_ptr.vmem [resolvable:$true] %s3353_s21 }
 0x4dc   :  { %v1723_v55 = vsub.f32 %v3314_v8, %v1706_v24  ;;  %v1724_v4 = vsub.f32 %v3319_v10, %v1706_v24  ;;  %v1725_v11 = vsub.f32 %v3324_v9, %v1706_v24  ;;  %v1726_v43 = vsub.f32 %v3329_v28, %v1706_v24  ;;  %v1755_v10 = vpop.permute.xlu1 %1754  ;;  %s2213_s22 = scalar_lea.vmem %s1812_s21, 2048  ;;  %p2218_p9 = scmp.lt.s32.totalorder %s1812_s21, %s1812_s21 }
 0x4dd   :  { %v1711_v60 = vadd.f32 1e-05, %v1709_v3  ;;  %v1727_v41 = vsub.f32 %v1582_v13, %v1706_v24  ;;  %v1728_v18 = vsub.f32 %v1651_v63, %v1706_v24  ;;  %v1729_v39 = vsub.f32 %v1653_v32, %v1706_v24  ;;  %p2214_p8 = scmp.ne.s32.totalorder %s1812_s21, %s2213_s22  ;;  %p2219_p10 = scmp.lt.s32.totalorder %s2213_s22, %s2213_s22 }
 0x4df   :  { %2173 = vrsqrt.f32 %v1711_v60  ;;  %p2220_p11 = por %p2219_p10, %p2218_p9 }
 0x4e1   :  { %p2221_p12 = pnand %p2220_p11, %p2214_p8 }
 0x4e9   :  { %v2174_v35 = vpop.eup %2173 }
 0x4ea   :  { %v1713_v44 = vmul.f32 %v2174_v35, %v1710_v42  ;;  %v2189_v35 = vld [vmem:[#allocation2 + $0x70] sm:$0xff] }
 0x4ec   :  { %1732 = vperm.xlu0 %2134, %v1713_v44  }
 0x56b   :  { %v1733_v59 = vpop.permute.xlu0 %1732 }
 0x56c   :  { %v1735_v5 = vmul.f32 %v1733_v59, %v1714_v45  ;;  %v1736_v16 = vmul.f32 %v1733_v59, %v1715_v50  ;;  %v1737_v54 = vmul.f32 %v1733_v59, %v1716_v52  ;;  %v1738_v53 = vmul.f32 %v1733_v59, %v1717_v15  ;;  %v2180_v50 = vld [vmem:[#allocation2 + $0x28] sm:$0xff]  ;;  %v2181_v15 = vld [vmem:[#allocation2 + $0x30] sm:$0xff] }
 0x56d   :  { %v1739_v36 = vmul.f32 %v1733_v59, %v1718_v47  ;;  %v1740_v40 = vmul.f32 %v1733_v59, %v1719_v51  ;;  %v1741_v22 = vmul.f32 %v1733_v59, %v1720_v21  ;;  %v1742_v8 = vmul.f32 %v1733_v59, %v1721_v49  ;;  %v2182_v51 = vld [vmem:[#allocation2 + $0x38] sm:$0xff]  ;;  %v2183_v21 = vld [vmem:[#allocation2 + $0x40] sm:$0xff] }
 0x56e   :  { %v1743_v29 = vmul.f32 %v1733_v59, %v1722_v30  ;;  %v1744_v31 = vmul.f32 %v1733_v59, %v1723_v55  ;;  %v1745_v57 = vmul.f32 %v1733_v59, %v1724_v4  ;;  %v1746_v2 = vmul.f32 %v1733_v59, %v1725_v11  ;;  %v2184_v30 = vld [vmem:[#allocation2 + $0x48] sm:$0xff]  ;;  %v2185_v4 = vld [vmem:[#allocation2 + $0x50] sm:$0xff] }
 0x56f   :  { %v1747_v17 = vmul.f32 %v1733_v59, %v1726_v43  ;;  %v1748_v23 = vmul.f32 %v1733_v59, %v1727_v41  ;;  %v1749_v9 = vmul.f32 %v1733_v59, %v1728_v18  ;;  %v1750_v26 = vmul.f32 %v1733_v59, %v1729_v39  ;;  %v2186_v43 = vld [vmem:[#allocation2 + $0x58] sm:$0xff]  ;;  %v2187_v41 = vld [vmem:[#allocation2 + $0x60] sm:$0xff]  ;;  %v2188_v39 = vld [vmem:[#allocation2 + $0x68] sm:$0xff] }
 0x570   :  { %v1757_v27 = vadd.f32 %v1755_v10, %v1735_v5  ;;  %v1758_v38 = vadd.f32 %v1755_v10, %v1736_v16  ;;  %v1759_v28 = vadd.f32 %v1755_v10, %v1737_v54  ;;  %v1760_v14 = vadd.f32 %v1755_v10, %v1738_v53  ;;  %v2190_v59 = vld [vmem:[#allocation2 + $0x78] sm:$0xff] }
 0x571   :  { %v1761_v56 = vadd.f32 %v1755_v10, %v1739_v36  ;;  %v1762_v0 = vadd.f32 %v1755_v10, %v1740_v40  ;;  %v1763_v13 = vadd.f32 %v1755_v10, %v1741_v22  ;;  %v1764_v48 = vadd.f32 %v1755_v10, %v1742_v8 }
 0x572   :  { %v1765_v46 = vadd.f32 %v1755_v10, %v1743_v29  ;;  %v1766_v58 = vadd.f32 %v1755_v10, %v1744_v31  ;;  %v1767_v63 = vadd.f32 %v1755_v10, %v1745_v57  ;;  %v1768_v19 = vadd.f32 %v1755_v10, %v1746_v2 }
 0x573   :  { %v1769_v37 = vadd.f32 %v1755_v10, %v1747_v17  ;;  %v1770_v32 = vadd.f32 %v1755_v10, %v1748_v23  ;;  %v1771_v12 = vadd.f32 %v1755_v10, %v1749_v9  ;;  %v1772_v7 = vadd.f32 %v1755_v10, %v1750_v26 }
 0x574   :  { %v1773_v1 = vadd.f32 %v2175_v34, %v1757_v27  ;;  %v1774_v61 = vadd.f32 %v2176_v20, %v1758_v38  ;;  %v1775_v24 = vadd.f32 %v2177_v6, %v1759_v28  ;;  %v1776_v33 = vadd.f32 %v2178_v25, %v1760_v14 }
 0x575   :  { %v1777_v45 = vadd.f32 %v2179_v62, %v1761_v56  ;;  %v1778_v52 = vadd.f32 %v2180_v50, %v1762_v0  ;;  %v1779_v47 = vadd.f32 %v2181_v15, %v1763_v13  ;;  %v1780_v3 = vadd.f32 %v2182_v51, %v1764_v48 }
 0x576   :  { %v1781_v49 = vadd.f32 %v2183_v21, %v1765_v46  ;;  %v1782_v55 = vadd.f32 %v2184_v30, %v1766_v58  ;;  %v1783_v11 = vadd.f32 %v2185_v4, %v1767_v63  ;;  %v1784_v60 = vadd.f32 %v2186_v43, %v1768_v19  ;;  %1789 = vst [vmem:[#allocation5] sm:$0xff] %v1773_v1 }
 0x577   :  { %1790 = vst [vmem:[#allocation5 + $0x8] sm:$0xff] %v1774_v61  ;;  %1791 = vst [vmem:[#allocation5 + $0x10] sm:$0xff] %v1775_v24  ;;  %v1785_v18 = vadd.f32 %v2187_v41, %v1769_v37  ;;  %v1786_v42 = vadd.f32 %v2188_v39, %v1770_v32  ;;  %v1787_v44 = vadd.f32 %v2189_v35, %v1771_v12 }
 0x578   :  { %1792 = vst [vmem:[#allocation5 + $0x18] sm:$0xff] %v1776_v33  ;;  %v1788_v5 = vadd.f32 %v2190_v59, %v1772_v7  ;;  %1793 = vst [vmem:[#allocation5 + $0x20] sm:$0xff] %v1777_v45 }
 0x579   :  { %1794 = vst [vmem:[#allocation5 + $0x28] sm:$0xff] %v1778_v52  ;;  %1795 = vst [vmem:[#allocation5 + $0x30] sm:$0xff] %v1779_v47 }
 0x57a   :  { %1796 = vst [vmem:[#allocation5 + $0x38] sm:$0xff] %v1780_v3  ;;  %1797 = vst [vmem:[#allocation5 + $0x40] sm:$0xff] %v1781_v49 }
 0x57b   :  { %1798 = vst [vmem:[#allocation5 + $0x48] sm:$0xff] %v1782_v55  ;;  %1799 = vst [vmem:[#allocation5 + $0x50] sm:$0xff] %v1783_v11 }
 0x57c   :  { %1800 = vst [vmem:[#allocation5 + $0x58] sm:$0xff] %v1784_v60  ;;  %1801 = vst [vmem:[#allocation5 + $0x60] sm:$0xff] %v1785_v18 }
 0x57d   :  { %1802 = vst [vmem:[#allocation5 + $0x68] sm:$0xff] %v1786_v42  ;;  %1803 = vst [vmem:[#allocation5 + $0x70] sm:$0xff] %v1787_v44 }
 0x57e   :  { %1804 = vst [vmem:[#allocation5 + $0x78] sm:$0xff] %v1788_v5 }
 0x57f   :  { %2224 = shalt.err (!%p2221_p12)
}
 0x580   :  { %s2225_s25 = scalar_lea.hbm %s3375_s7, 2048 }
 0x581   :  { %p2226_p13 = scmp.ne.s32.totalorder %s3375_s7, %s2225_s25  ;;  %p2229_p0 = scmp.lt.u32.totalorder %s2225_s25, %s3375_s7 }
 0x583   :  { %p2231_p1 = pnand %p2229_p0, %p2226_p13 }
 0x585   :  { %2234 = shalt.err (!%p2231_p1)
}
 0x586   :  { %1814 = dma.vmem_to_hbm [thread:$0]  %s1812_s21, 2048, %s3375_s7, [#allocation4]  }
 0x587   :  { %2237 = dma.done.wait [#allocation4], 2048  }
 0x588   :  { %2238 = vsyncadd [#allocation4], 4294965248 }
 0x589   :  { %1818 = vsyncpa [#allocation3], 1 }
 0x58a   :  { %1819 = vsyncpa [#allocation4], 1 }

</bundles_post_ra>
